<compile_context>
chip_gen: v7x
topology: tpu7x:2x2x1
jax: 0.10.0
libtpu: 0.0.40
codegen_flags: <defaults>
</compile_context>

<pallas_src>
import jax
import jax.numpy as jnp
import numpy as np
from jax.experimental import pallas as pl
from jax.experimental.pallas import tpu as pltpu

LN_EPS = 1e-5


def _layer_norm_c(x, w, b):
    # LayerNorm2d: normalize over channel dim (last dim in NHWC), affine.
    mu = jnp.mean(x, axis=-1, keepdims=True)
    var = jnp.mean(jnp.square(x - mu), axis=-1, keepdims=True)
    return (x - mu) * jax.lax.rsqrt(var + LN_EPS) * w + b


def _softmax_last(a):
    m = jnp.max(a, axis=-1, keepdims=True)
    e = jnp.exp(a - m)
    # approx reciprocal lowers to the otherwise-idle EUP slot.
    return e * pl.reciprocal(jnp.sum(e, axis=-1, keepdims=True), approx=True)


def scam_kernel(xl_ref, xr_ref, w_ref, v_ref, ol_ref, or_ref):
    xl = xl_ref[0]  # (TH, W, C) f32
    xr = xr_ref[0]  # (TH, W, C) f32

    ln_w_l, ln_b_l = v_ref[0], v_ref[1]
    ln_w_r, ln_b_r = v_ref[2], v_ref[3]
    b_l1, b_r1 = v_ref[4], v_ref[5]
    b_l2, b_r2 = v_ref[6], v_ref[7]
    beta, gamma = v_ref[8], v_ref[9]

    nl = _layer_norm_c(xl, ln_w_l, ln_b_l)
    nr = _layer_norm_c(xr, ln_w_r, ln_b_r)

    # 1x1 conv == per-pixel channel matmul; weights stored as (C_in, C_out).
    # w_ref[0] / b_l1 already carry the c^-0.5 attention scale (folded in the
    # wrapper), so no per-element scaling of the attention tensor is needed.
    q_l = jnp.einsum('hwc,cd->hwd', nl, w_ref[0],
                     preferred_element_type=jnp.float32) + b_l1
    q_r = jnp.einsum('hwc,cd->hwd', nr, w_ref[1],
                     preferred_element_type=jnp.float32) + b_r1
    v_l = jnp.einsum('hwc,cd->hwd', xl, w_ref[2],
                     preferred_element_type=jnp.float32) + b_l2
    v_r = jnp.einsum('hwc,cd->hwd', xr, w_ref[3],
                     preferred_element_type=jnp.float32) + b_r2

    # bf16 operands on the MXU with f32 accumulation.
    q_l16 = q_l.astype(jnp.bfloat16)
    q_r16 = q_r.astype(jnp.bfloat16)
    v_l16 = v_l.astype(jnp.bfloat16)
    v_r16 = v_r.astype(jnp.bfloat16)

    # right -> left attention.
    att = jnp.einsum('hwc,hvc->hwv', q_l16, q_r16,
                     preferred_element_type=jnp.float32)         # (TH, W, W)
    p_r2l = _softmax_last(att).astype(jnp.bfloat16)
    f_r2l = jnp.einsum('hwv,hvc->hwc', p_r2l, v_r16,
                       preferred_element_type=jnp.float32)
    ol_ref[0] = xl + f_r2l * beta
    # `att` / `p_r2l` are dead from here: attention live memory ~1x (TH, W, W).

    # left -> right attention: recompute the transposed score matrix on the
    # MXU instead of pushing (TH, W, W) f32 through the XLU with swapaxes.
    att_t = jnp.einsum('hvc,hwc->hvw', q_r16, q_l16,
                       preferred_element_type=jnp.float32)       # (TH, W, W)
    p_l2r = _softmax_last(att_t).astype(jnp.bfloat16)
    f_l2r = jnp.einsum('hvw,hwc->hvc', p_l2r, v_l16,
                       preferred_element_type=jnp.float32)
    or_ref[0] = xr + f_l2r * gamma


def _estimate_vmem_bytes(th, W, C):
    f32 = 4
    io = 4 * 2 * th * W * C * f32              # 2 in + 2 out tiles, double-buffered
    temps = 10 * th * W * C * f32              # nl/nr, q/v (f32 + bf16 copies), f_*
    att = 2 * th * W * W * (f32 + 2)           # score f32 + bf16 probs, w/ headroom
    prm = 2 * (4 * C * C + 10 * C) * f32       # packed params, double-buffered
    return io + temps + att + prm


def _pick_tile_h(H, W, C, budget_bytes):
    best = 1
    for th in range(1, H + 1):
        if H % th == 0 and _estimate_vmem_bytes(th, W, C) <= budget_bytes:
            best = th
    return best


def scam_fusion_pallas(x_l_nchw, x_r_nchw, params, *, tile_h=None,
                       vmem_budget_bytes=24 * 1024 * 1024):
    """x_l, x_r: (B, C, H, W) float32 (PyTorch layout). Returns same layout."""
    B, C, H, W = x_l_nchw.shape
    # TODO(synk): NCHW<->NHWC permutes are separate XLA transposes; fuse them
    #             into the Pallas pipeline for a fully memory-bound deployment.
    x_l = jnp.transpose(x_l_nchw, (0, 2, 3, 1)).astype(jnp.float32)
    x_r = jnp.transpose(x_r_nchw, (0, 2, 3, 1)).astype(jnp.float32)

    scale = float(C) ** -0.5
    # Fold the c^-0.5 attention scale into the left Q projection.
    w_stack = jnp.stack([params["w_l1"] * scale, params["w_r1"],
                         params["w_l2"], params["w_r2"]], axis=0)      # (4, C, C)
    v_stack = jnp.stack([params["ln_w_l"], params["ln_b_l"],
                         params["ln_w_r"], params["ln_b_r"],
                         params["b_l1"] * scale, params["b_r1"],
                         params["b_l2"], params["b_r2"],
                         params["beta"], params["gamma"]], axis=0)     # (10, C)

    if tile_h is None:
        tile_h = _pick_tile_h(H, W, C, vmem_budget_bytes)
    assert H % tile_h == 0, "tile_h must divide H"
    n_th = H // tile_h

    vmem_limit = int(min(64 * 1024 * 1024,
                         max(16 * 1024 * 1024,
                             2 * _estimate_vmem_bytes(tile_h, W, C))))

    # Row-tile only along H so the last two block dims (W, C) stay full-extent
    # (satisfies the (8,128) constraint at arbitrary W, C).
    img_spec = pl.BlockSpec((1, tile_h, W, C), lambda b, t: (b, t, 0, 0))
    w_spec = pl.BlockSpec((4, C, C), lambda b, t: (0, 0, 0))
    v_spec = pl.BlockSpec((10, C), lambda b, t: (0, 0))

    grid_spec = pltpu.PrefetchScalarGridSpec(
        num_scalar_prefetch=0,
        grid=(B, n_th),
        in_specs=[img_spec, img_spec, w_spec, v_spec],
        out_specs=[img_spec, img_spec],
    )

    out_l, out_r = pl.pallas_call(
        scam_kernel,
        grid_spec=grid_spec,
        out_shape=(jax.ShapeDtypeStruct((B, H, W, C), jnp.float32),
                   jax.ShapeDtypeStruct((B, H, W, C), jnp.float32)),
        compiler_params=pltpu.CompilerParams(
            dimension_semantics=("parallel", "parallel"),
            vmem_limit_bytes=vmem_limit),
    )(x_l, x_r, w_stack, v_stack)

    # back to NCHW
    return (jnp.transpose(out_l, (0, 3, 1, 2)),
            jnp.transpose(out_r, (0, 3, 1, 2)))


def scam_fusion_ref(x_l_nchw, x_r_nchw, params):
    """Pure-JAX f32 reference (mirrors the PyTorch SCAM forward)."""
    C = x_l_nchw.shape[1]
    x_l = jnp.transpose(x_l_nchw, (0, 2, 3, 1))
    x_r = jnp.transpose(x_r_nchw, (0, 2, 3, 1))
    nl = _layer_norm_c(x_l, params["ln_w_l"], params["ln_b_l"])
    nr = _layer_norm_c(x_r, params["ln_w_r"], params["ln_b_r"])
    q_l = jnp.einsum('bhwc,cd->bhwd', nl, params["w_l1"]) + params["b_l1"]
    q_r = jnp.einsum('bhwc,cd->bhwd', nr, params["w_r1"]) + params["b_r1"]
    v_l = jnp.einsum('bhwc,cd->bhwd', x_l, params["w_l2"]) + params["b_l2"]
    v_r = jnp.einsum('bhwc,cd->bhwd', x_r, params["w_r2"]) + params["b_r2"]
    att = jnp.einsum('bhwc,bhvc->bhwv', q_l, q_r) * (float(C) ** -0.5)
    f_r2l = jnp.einsum('bhwv,bhvc->bhwc', jax.nn.softmax(att, axis=-1), v_r)
    f_l2r = jnp.einsum('bhwv,bhvc->bhwc',
                       jax.nn.softmax(jnp.swapaxes(att, -1, -2), axis=-1), v_l)
    out_l = x_l + f_r2l * params["beta"]
    out_r = x_r + f_l2r * params["gamma"]
    return (jnp.transpose(out_l, (0, 3, 1, 2)),
            jnp.transpose(out_r, (0, 3, 1, 2)))


def make_params(key, C):
    ks = jax.random.split(key, 12)
    std = 0.1
    return {
        "ln_w_l": jnp.ones((C,), jnp.float32),
        "ln_b_l": jnp.zeros((C,), jnp.float32),
        "ln_w_r": jnp.ones((C,), jnp.float32),
        "ln_b_r": jnp.zeros((C,), jnp.float32),
        # 1x1 conv weights stored as (C_in, C_out)
        "w_l1": std * jax.random.normal(ks[0], (C, C), jnp.float32),
        "b_l1": std * jax.random.normal(ks[1], (C,), jnp.float32),
        "w_r1": std * jax.random.normal(ks[2], (C, C), jnp.float32),
        "b_r1": std * jax.random.normal(ks[3], (C,), jnp.float32),
        "w_l2": std * jax.random.normal(ks[4], (C, C), jnp.float32),
        "b_l2": std * jax.random.normal(ks[5], (C,), jnp.float32),
        "w_r2": std * jax.random.normal(ks[6], (C, C), jnp.float32),
        "b_r2": std * jax.random.normal(ks[7], (C,), jnp.float32),
        # PyTorch inits beta/gamma to zeros; use small deterministic non-zero
        # values so the cross-attention path is actually exercised.
        "beta": std * jax.random.normal(ks[8], (C,), jnp.float32),
        "gamma": std * jax.random.normal(ks[9], (C,), jnp.float32),
    }


if __name__ == "__main__":
    B, C, H, W = 2, 4, 16, 16
    key = jax.random.PRNGKey(0)
    k1, k2, k3 = jax.random.split(key, 3)
    x_l = jax.random.normal(k1, (B, C, H, W), jnp.float32)
    x_r = jax.random.normal(k2, (B, C, H, W), jnp.float32)
    params = make_params(k3, C)

    # tile_h=8 so the row-tile grid axis (grid=(B, H//TH)=(2, 2)) is exercised.
    out_l, out_r = scam_fusion_pallas(x_l, x_r, params, tile_h=8)
    out_l = jax.block_until_ready(out_l)
    out_r = jax.block_until_ready(out_r)

    ref_l, ref_r = scam_fusion_ref(x_l, x_r, params)
    # Tolerance relaxed vs f32 reference: attention matmuls use bf16 MXU
    # operands (f32 accumulation) and the softmax uses approx reciprocal.
    np.testing.assert_allclose(np.asarray(out_l), np.asarray(ref_l),
                               rtol=2e-2, atol=2e-2)
    np.testing.assert_allclose(np.asarray(out_r), np.asarray(ref_r),
                               rtol=2e-2, atol=2e-2)
    print("KERNEL_OK")
</pallas_src>

<mosaic_0001>
module attributes {stable_mosaic.version = 11 : i64} {
  func.func @scam_kernel(%arg0: i32, %arg1: i32, %arg2: memref<1x8x16x4xf32, #tpu.memory_space<vmem>>, %arg3: memref<1x8x16x4xf32, #tpu.memory_space<vmem>>, %arg4: memref<4x4x4xf32, #tpu.memory_space<vmem>>, %arg5: memref<10x4xf32, #tpu.memory_space<vmem>>, %arg6: memref<1x8x16x4xf32, #tpu.memory_space<vmem>>, %arg7: memref<1x8x16x4xf32, #tpu.memory_space<vmem>>) attributes {dimension_semantics = [#tpu.dimension_semantics<parallel>, #tpu.dimension_semantics<parallel>], iteration_bounds = array<i64: 2, 2>, scalar_prefetch = 0 : i64, scratch_operands = 0 : i64, tpu.core_type = #tpu.core_type<tc>, window_params = [{transform_indices = @transform_0, window_bounds = array<i64: 1, 8, 16, 4>}, {transform_indices = @transform_1, window_bounds = array<i64: 1, 8, 16, 4>}, {pipeline_mode = #tpu.pipeline_mode<synchronous>, transform_indices = @transform_2, window_bounds = array<i64: 4, 4, 4>}, {pipeline_mode = #tpu.pipeline_mode<synchronous>, transform_indices = @transform_3, window_bounds = array<i64: 10, 4>}, {transform_indices = @transform_4, window_bounds = array<i64: 1, 8, 16, 4>}, {transform_indices = @transform_5, window_bounds = array<i64: 1, 8, 16, 4>}]} {
    %c0 = arith.constant 0 : index
    %c0_0 = arith.constant 0 : index
    %c0_1 = arith.constant 0 : index
    %c0_2 = arith.constant 0 : index
    %0 = vector.load %arg2[%c0, %c0_0, %c0_1, %c0_2] : memref<1x8x16x4xf32, #tpu.memory_space<vmem>>, vector<1x8x16x4xf32>
    %1 = vector.shape_cast %0 : vector<1x8x16x4xf32> to vector<8x16x4xf32>
    %c0_3 = arith.constant 0 : index
    %c0_4 = arith.constant 0 : index
    %c0_5 = arith.constant 0 : index
    %c0_6 = arith.constant 0 : index
    %2 = vector.load %arg3[%c0_3, %c0_4, %c0_5, %c0_6] : memref<1x8x16x4xf32, #tpu.memory_space<vmem>>, vector<1x8x16x4xf32>
    %3 = vector.shape_cast %2 : vector<1x8x16x4xf32> to vector<8x16x4xf32>
    %c0_7 = arith.constant 0 : index
    %c0_8 = arith.constant 0 : index
    %4 = vector.load %arg5[%c0_7, %c0_8] : memref<10x4xf32, #tpu.memory_space<vmem>>, vector<1x4xf32>
    %5 = vector.shape_cast %4 : vector<1x4xf32> to vector<4xf32>
    %c1 = arith.constant 1 : index
    %c0_9 = arith.constant 0 : index
    %6 = vector.load %arg5[%c1, %c0_9] : memref<10x4xf32, #tpu.memory_space<vmem>>, vector<1x4xf32>
    %7 = vector.shape_cast %6 : vector<1x4xf32> to vector<4xf32>
    %c2 = arith.constant 2 : index
    %c0_10 = arith.constant 0 : index
    %8 = vector.load %arg5[%c2, %c0_10] : memref<10x4xf32, #tpu.memory_space<vmem>>, vector<1x4xf32>
    %9 = vector.shape_cast %8 : vector<1x4xf32> to vector<4xf32>
    %c3 = arith.constant 3 : index
    %c0_11 = arith.constant 0 : index
    %10 = vector.load %arg5[%c3, %c0_11] : memref<10x4xf32, #tpu.memory_space<vmem>>, vector<1x4xf32>
    %11 = vector.shape_cast %10 : vector<1x4xf32> to vector<4xf32>
    %c4 = arith.constant 4 : index
    %c0_12 = arith.constant 0 : index
    %12 = vector.load %arg5[%c4, %c0_12] : memref<10x4xf32, #tpu.memory_space<vmem>>, vector<1x4xf32>
    %13 = vector.shape_cast %12 : vector<1x4xf32> to vector<4xf32>
    %c5 = arith.constant 5 : index
    %c0_13 = arith.constant 0 : index
    %14 = vector.load %arg5[%c5, %c0_13] : memref<10x4xf32, #tpu.memory_space<vmem>>, vector<1x4xf32>
    %15 = vector.shape_cast %14 : vector<1x4xf32> to vector<4xf32>
    %c6 = arith.constant 6 : index
    %c0_14 = arith.constant 0 : index
    %16 = vector.load %arg5[%c6, %c0_14] : memref<10x4xf32, #tpu.memory_space<vmem>>, vector<1x4xf32>
    %17 = vector.shape_cast %16 : vector<1x4xf32> to vector<4xf32>
    %c7 = arith.constant 7 : index
    %c0_15 = arith.constant 0 : index
    %18 = vector.load %arg5[%c7, %c0_15] : memref<10x4xf32, #tpu.memory_space<vmem>>, vector<1x4xf32>
    %19 = vector.shape_cast %18 : vector<1x4xf32> to vector<4xf32>
    %c8 = arith.constant 8 : index
    %c0_16 = arith.constant 0 : index
    %20 = vector.load %arg5[%c8, %c0_16] : memref<10x4xf32, #tpu.memory_space<vmem>>, vector<1x4xf32>
    %21 = vector.shape_cast %20 : vector<1x4xf32> to vector<4xf32>
    %c9 = arith.constant 9 : index
    %c0_17 = arith.constant 0 : index
    %22 = vector.load %arg5[%c9, %c0_17] : memref<10x4xf32, #tpu.memory_space<vmem>>, vector<1x4xf32>
    %23 = vector.shape_cast %22 : vector<1x4xf32> to vector<4xf32>
    %cst = arith.constant dense<0.000000e+00> : vector<8x16xf32>
    %24 = vector.multi_reduction <add>, %1, %cst [2] : vector<8x16x4xf32> to vector<8x16xf32>
    %25 = vector.shape_cast %24 : vector<8x16xf32> to vector<8x16x1xf32>
    %cst_18 = arith.constant 4.000000e+00 : f32
    %26 = vector.broadcast %cst_18 : f32 to vector<8x16x1xf32>
    %27 = arith.divf %25, %26 : vector<8x16x1xf32>
    %28 = vector.broadcast %27 : vector<8x16x1xf32> to vector<8x16x4xf32>
    %29 = arith.subf %1, %28 : vector<8x16x4xf32>
    %30 = arith.mulf %29, %29 : vector<8x16x4xf32>
    %cst_19 = arith.constant dense<0.000000e+00> : vector<8x16xf32>
    %31 = vector.multi_reduction <add>, %30, %cst_19 [2] : vector<8x16x4xf32> to vector<8x16xf32>
    %32 = vector.shape_cast %31 : vector<8x16xf32> to vector<8x16x1xf32>
    %cst_20 = arith.constant 4.000000e+00 : f32
    %33 = vector.broadcast %cst_20 : f32 to vector<8x16x1xf32>
    %34 = arith.divf %32, %33 : vector<8x16x1xf32>
    %35 = vector.broadcast %27 : vector<8x16x1xf32> to vector<8x16x4xf32>
    %36 = arith.subf %1, %35 : vector<8x16x4xf32>
    %cst_21 = arith.constant 9.99999974E-6 : f32
    %37 = vector.broadcast %cst_21 : f32 to vector<8x16x1xf32>
    %38 = arith.addf %34, %37 : vector<8x16x1xf32>
    %39 = math.rsqrt %38 : vector<8x16x1xf32>
    %40 = vector.broadcast %39 : vector<8x16x1xf32> to vector<8x16x4xf32>
    %41 = arith.mulf %36, %40 : vector<8x16x4xf32>
    %42 = vector.shape_cast %5 : vector<4xf32> to vector<1x1x4xf32>
    %43 = vector.broadcast %42 : vector<1x1x4xf32> to vector<8x16x4xf32>
    %44 = arith.mulf %41, %43 : vector<8x16x4xf32>
    %45 = vector.shape_cast %7 : vector<4xf32> to vector<1x1x4xf32>
    %46 = vector.broadcast %45 : vector<1x1x4xf32> to vector<8x16x4xf32>
    %47 = arith.addf %44, %46 : vector<8x16x4xf32>
    %cst_22 = arith.constant dense<0.000000e+00> : vector<8x16xf32>
    %48 = vector.multi_reduction <add>, %3, %cst_22 [2] : vector<8x16x4xf32> to vector<8x16xf32>
    %49 = vector.shape_cast %48 : vector<8x16xf32> to vector<8x16x1xf32>
    %cst_23 = arith.constant 4.000000e+00 : f32
    %50 = vector.broadcast %cst_23 : f32 to vector<8x16x1xf32>
    %51 = arith.divf %49, %50 : vector<8x16x1xf32>
    %52 = vector.broadcast %51 : vector<8x16x1xf32> to vector<8x16x4xf32>
    %53 = arith.subf %3, %52 : vector<8x16x4xf32>
    %54 = arith.mulf %53, %53 : vector<8x16x4xf32>
    %cst_24 = arith.constant dense<0.000000e+00> : vector<8x16xf32>
    %55 = vector.multi_reduction <add>, %54, %cst_24 [2] : vector<8x16x4xf32> to vector<8x16xf32>
    %56 = vector.shape_cast %55 : vector<8x16xf32> to vector<8x16x1xf32>
    %cst_25 = arith.constant 4.000000e+00 : f32
    %57 = vector.broadcast %cst_25 : f32 to vector<8x16x1xf32>
    %58 = arith.divf %56, %57 : vector<8x16x1xf32>
    %59 = vector.broadcast %51 : vector<8x16x1xf32> to vector<8x16x4xf32>
    %60 = arith.subf %3, %59 : vector<8x16x4xf32>
    %cst_26 = arith.constant 9.99999974E-6 : f32
    %61 = vector.broadcast %cst_26 : f32 to vector<8x16x1xf32>
    %62 = arith.addf %58, %61 : vector<8x16x1xf32>
    %63 = math.rsqrt %62 : vector<8x16x1xf32>
    %64 = vector.broadcast %63 : vector<8x16x1xf32> to vector<8x16x4xf32>
    %65 = arith.mulf %60, %64 : vector<8x16x4xf32>
    %66 = vector.shape_cast %9 : vector<4xf32> to vector<1x1x4xf32>
    %67 = vector.broadcast %66 : vector<1x1x4xf32> to vector<8x16x4xf32>
    %68 = arith.mulf %65, %67 : vector<8x16x4xf32>
    %69 = vector.shape_cast %11 : vector<4xf32> to vector<1x1x4xf32>
    %70 = vector.broadcast %69 : vector<1x1x4xf32> to vector<8x16x4xf32>
    %71 = arith.addf %68, %70 : vector<8x16x4xf32>
    %c0_27 = arith.constant 0 : index
    %c0_28 = arith.constant 0 : index
    %c0_29 = arith.constant 0 : index
    %72 = vector.load %arg4[%c0_27, %c0_28, %c0_29] : memref<4x4x4xf32, #tpu.memory_space<vmem>>, vector<1x4x4xf32>
    %73 = vector.shape_cast %72 : vector<1x4x4xf32> to vector<4x4xf32>
    "tpu.trace_start"() <{level = 10 : i32, message = "hwc,cd->hwd"}> : () -> ()
    %cst_30 = arith.constant dense<0.000000e+00> : vector<8x16x4xf32>
    %74 = tpu.matmul %47, %73, %cst_30 {dimension_numbers = #tpu.dot_dimension_numbers<[2], [0], [0, 1], [1], [0, 0, 0, 1, 1, 1], [], []>} : vector<8x16x4xf32>, vector<4x4xf32>, vector<8x16x4xf32> -> vector<8x16x4xf32>
    "tpu.trace_stop"() : () -> ()
    %75 = vector.shape_cast %13 : vector<4xf32> to vector<1x1x4xf32>
    %76 = vector.broadcast %75 : vector<1x1x4xf32> to vector<8x16x4xf32>
    %77 = arith.addf %74, %76 : vector<8x16x4xf32>
    %c1_31 = arith.constant 1 : index
    %c0_32 = arith.constant 0 : index
    %c0_33 = arith.constant 0 : index
    %78 = vector.load %arg4[%c1_31, %c0_32, %c0_33] : memref<4x4x4xf32, #tpu.memory_space<vmem>>, vector<1x4x4xf32>
    %79 = vector.shape_cast %78 : vector<1x4x4xf32> to vector<4x4xf32>
    "tpu.trace_start"() <{level = 10 : i32, message = "hwc,cd->hwd"}> : () -> ()
    %cst_34 = arith.constant dense<0.000000e+00> : vector<8x16x4xf32>
    %80 = tpu.matmul %71, %79, %cst_34 {dimension_numbers = #tpu.dot_dimension_numbers<[2], [0], [0, 1], [1], [0, 0, 0, 1, 1, 1], [], []>} : vector<8x16x4xf32>, vector<4x4xf32>, vector<8x16x4xf32> -> vector<8x16x4xf32>
    "tpu.trace_stop"() : () -> ()
    %81 = vector.shape_cast %15 : vector<4xf32> to vector<1x1x4xf32>
    %82 = vector.broadcast %81 : vector<1x1x4xf32> to vector<8x16x4xf32>
    %83 = arith.addf %80, %82 : vector<8x16x4xf32>
    %c2_35 = arith.constant 2 : index
    %c0_36 = arith.constant 0 : index
    %c0_37 = arith.constant 0 : index
    %84 = vector.load %arg4[%c2_35, %c0_36, %c0_37] : memref<4x4x4xf32, #tpu.memory_space<vmem>>, vector<1x4x4xf32>
    %85 = vector.shape_cast %84 : vector<1x4x4xf32> to vector<4x4xf32>
    "tpu.trace_start"() <{level = 10 : i32, message = "hwc,cd->hwd"}> : () -> ()
    %cst_38 = arith.constant dense<0.000000e+00> : vector<8x16x4xf32>
    %86 = tpu.matmul %1, %85, %cst_38 {dimension_numbers = #tpu.dot_dimension_numbers<[2], [0], [0, 1], [1], [0, 0, 0, 1, 1, 1], [], []>} : vector<8x16x4xf32>, vector<4x4xf32>, vector<8x16x4xf32> -> vector<8x16x4xf32>
    "tpu.trace_stop"() : () -> ()
    %87 = vector.shape_cast %17 : vector<4xf32> to vector<1x1x4xf32>
    %88 = vector.broadcast %87 : vector<1x1x4xf32> to vector<8x16x4xf32>
    %89 = arith.addf %86, %88 : vector<8x16x4xf32>
    %c3_39 = arith.constant 3 : index
    %c0_40 = arith.constant 0 : index
    %c0_41 = arith.constant 0 : index
    %90 = vector.load %arg4[%c3_39, %c0_40, %c0_41] : memref<4x4x4xf32, #tpu.memory_space<vmem>>, vector<1x4x4xf32>
    %91 = vector.shape_cast %90 : vector<1x4x4xf32> to vector<4x4xf32>
    "tpu.trace_start"() <{level = 10 : i32, message = "hwc,cd->hwd"}> : () -> ()
    %cst_42 = arith.constant dense<0.000000e+00> : vector<8x16x4xf32>
    %92 = tpu.matmul %3, %91, %cst_42 {dimension_numbers = #tpu.dot_dimension_numbers<[2], [0], [0, 1], [1], [0, 0, 0, 1, 1, 1], [], []>} : vector<8x16x4xf32>, vector<4x4xf32>, vector<8x16x4xf32> -> vector<8x16x4xf32>
    "tpu.trace_stop"() : () -> ()
    %93 = vector.shape_cast %19 : vector<4xf32> to vector<1x1x4xf32>
    %94 = vector.broadcast %93 : vector<1x1x4xf32> to vector<8x16x4xf32>
    %95 = arith.addf %92, %94 : vector<8x16x4xf32>
    %96 = arith.truncf %77 : vector<8x16x4xf32> to vector<8x16x4xbf16>
    %97 = arith.truncf %83 : vector<8x16x4xf32> to vector<8x16x4xbf16>
    %98 = arith.truncf %89 : vector<8x16x4xf32> to vector<8x16x4xbf16>
    %99 = arith.truncf %95 : vector<8x16x4xf32> to vector<8x16x4xbf16>
    "tpu.trace_start"() <{level = 10 : i32, message = "hwc,hvc->hwv"}> : () -> ()
    %cst_43 = arith.constant dense<0.000000e+00> : vector<8x16x16xf32>
    %100 = tpu.matmul %96, %97, %cst_43 {dimension_numbers = #tpu.dot_dimension_numbers<[2], [2], [1], [1], [0, 0, 0, 1, 1, 1], [0], [0]>} : vector<8x16x4xbf16>, vector<8x16x4xbf16>, vector<8x16x16xf32> -> vector<8x16x16xf32>
    "tpu.trace_stop"() : () -> ()
    %cst_44 = arith.constant dense<0xFF800000> : vector<8x16xf32>
    %101 = vector.multi_reduction <maximumf>, %100, %cst_44 [2] : vector<8x16x16xf32> to vector<8x16xf32>
    %102 = vector.shape_cast %101 : vector<8x16xf32> to vector<8x16x1xf32>
    %103 = vector.broadcast %102 : vector<8x16x1xf32> to vector<8x16x16xf32>
    %104 = arith.subf %100, %103 : vector<8x16x16xf32>
    %105 = math.exp %104 : vector<8x16x16xf32>
    %cst_45 = arith.constant dense<0.000000e+00> : vector<8x16xf32>
    %106 = vector.multi_reduction <add>, %105, %cst_45 [2] : vector<8x16x16xf32> to vector<8x16xf32>
    %107 = vector.shape_cast %106 : vector<8x16xf32> to vector<8x16x1xf32>
    %108 = tpu.reciprocal %107 {approx = true} : vector<8x16x1xf32> -> vector<8x16x1xf32>
    %109 = vector.broadcast %108 : vector<8x16x1xf32> to vector<8x16x16xf32>
    %110 = arith.mulf %105, %109 : vector<8x16x16xf32>
    %111 = arith.truncf %110 : vector<8x16x16xf32> to vector<8x16x16xbf16>
    "tpu.trace_start"() <{level = 10 : i32, message = "hwv,hvc->hwc"}> : () -> ()
    %cst_46 = arith.constant dense<0.000000e+00> : vector<8x16x4xf32>
    %112 = tpu.matmul %111, %99, %cst_46 {dimension_numbers = #tpu.dot_dimension_numbers<[2], [1], [1], [2], [0, 0, 0, 1, 1, 2], [0], [0]>} : vector<8x16x16xbf16>, vector<8x16x4xbf16>, vector<8x16x4xf32> -> vector<8x16x4xf32>
    "tpu.trace_stop"() : () -> ()
    %113 = vector.shape_cast %21 : vector<4xf32> to vector<1x1x4xf32>
    %114 = vector.broadcast %113 : vector<1x1x4xf32> to vector<8x16x4xf32>
    %115 = arith.mulf %112, %114 : vector<8x16x4xf32>
    %116 = arith.addf %1, %115 : vector<8x16x4xf32>
    %c0_47 = arith.constant 0 : index
    %c0_48 = arith.constant 0 : index
    %c0_49 = arith.constant 0 : index
    %c0_50 = arith.constant 0 : index
    %117 = vector.load %arg6[%c0_47, %c0_48, %c0_49, %c0_50] : memref<1x8x16x4xf32, #tpu.memory_space<vmem>>, vector<1x8x16x4xf32>
    %118 = vector.shape_cast %117 : vector<1x8x16x4xf32> to vector<8x16x4xf32>
    %119 = vector.shape_cast %116 : vector<8x16x4xf32> to vector<1x8x16x4xf32>
    tpu.vector_store %arg6[%c0_47, %c0_48, %c0_49, %c0_50], %119 {strides = array<i32>} : memref<1x8x16x4xf32, #tpu.memory_space<vmem>>, vector<1x8x16x4xf32>,
    "tpu.trace_start"() <{level = 10 : i32, message = "hvc,hwc->hvw"}> : () -> ()
    %cst_51 = arith.constant dense<0.000000e+00> : vector<8x16x16xf32>
    %120 = tpu.matmul %97, %96, %cst_51 {dimension_numbers = #tpu.dot_dimension_numbers<[2], [2], [1], [1], [0, 0, 0, 1, 1, 1], [0], [0]>} : vector<8x16x4xbf16>, vector<8x16x4xbf16>, vector<8x16x16xf32> -> vector<8x16x16xf32>
    "tpu.trace_stop"() : () -> ()
    %cst_52 = arith.constant dense<0xFF800000> : vector<8x16xf32>
    %121 = vector.multi_reduction <maximumf>, %120, %cst_52 [2] : vector<8x16x16xf32> to vector<8x16xf32>
    %122 = vector.shape_cast %121 : vector<8x16xf32> to vector<8x16x1xf32>
    %123 = vector.broadcast %122 : vector<8x16x1xf32> to vector<8x16x16xf32>
    %124 = arith.subf %120, %123 : vector<8x16x16xf32>
    %125 = math.exp %124 : vector<8x16x16xf32>
    %cst_53 = arith.constant dense<0.000000e+00> : vector<8x16xf32>
    %126 = vector.multi_reduction <add>, %125, %cst_53 [2] : vector<8x16x16xf32> to vector<8x16xf32>
    %127 = vector.shape_cast %126 : vector<8x16xf32> to vector<8x16x1xf32>
    %128 = tpu.reciprocal %127 {approx = true} : vector<8x16x1xf32> -> vector<8x16x1xf32>
    %129 = vector.broadcast %128 : vector<8x16x1xf32> to vector<8x16x16xf32>
    %130 = arith.mulf %125, %129 : vector<8x16x16xf32>
    %131 = arith.truncf %130 : vector<8x16x16xf32> to vector<8x16x16xbf16>
    "tpu.trace_start"() <{level = 10 : i32, message = "hvw,hwc->hvc"}> : () -> ()
    %cst_54 = arith.constant dense<0.000000e+00> : vector<8x16x4xf32>
    %132 = tpu.matmul %131, %98, %cst_54 {dimension_numbers = #tpu.dot_dimension_numbers<[2], [1], [1], [2], [0, 0, 0, 1, 1, 2], [0], [0]>} : vector<8x16x16xbf16>, vector<8x16x4xbf16>, vector<8x16x4xf32> -> vector<8x16x4xf32>
    "tpu.trace_stop"() : () -> ()
    %133 = vector.shape_cast %23 : vector<4xf32> to vector<1x1x4xf32>
    %134 = vector.broadcast %133 : vector<1x1x4xf32> to vector<8x16x4xf32>
    %135 = arith.mulf %132, %134 : vector<8x16x4xf32>
    %136 = arith.addf %3, %135 : vector<8x16x4xf32>
    %c0_55 = arith.constant 0 : index
    %c0_56 = arith.constant 0 : index
    %c0_57 = arith.constant 0 : index
    %c0_58 = arith.constant 0 : index
    %137 = vector.load %arg7[%c0_55, %c0_56, %c0_57, %c0_58] : memref<1x8x16x4xf32, #tpu.memory_space<vmem>>, vector<1x8x16x4xf32>
    %138 = vector.shape_cast %137 : vector<1x8x16x4xf32> to vector<8x16x4xf32>
    %139 = vector.shape_cast %136 : vector<8x16x4xf32> to vector<1x8x16x4xf32>
    tpu.vector_store %arg7[%c0_55, %c0_56, %c0_57, %c0_58], %139 {strides = array<i32>} : memref<1x8x16x4xf32, #tpu.memory_space<vmem>>, vector<1x8x16x4xf32>,
    return
  }
  func.func @transform_0(%arg0: i32, %arg1: i32) -> (i32, i32, i32, i32) {
    %c0_i32 = arith.constant 0 : i32
    %c0_i32_0 = arith.constant 0 : i32
    %c0_i32_1 = arith.constant 0 : i32
    return %arg0, %arg1, %c0_i32, %c0_i32_0 : i32, i32, i32, i32
  }
  func.func @transform_1(%arg0: i32, %arg1: i32) -> (i32, i32, i32, i32) {
    %c0_i32 = arith.constant 0 : i32
    %c0_i32_0 = arith.constant 0 : i32
    %c0_i32_1 = arith.constant 0 : i32
    return %arg0, %arg1, %c0_i32, %c0_i32_0 : i32, i32, i32, i32
  }
  func.func @transform_2(%arg0: i32, %arg1: i32) -> (i32, i32, i32) {
    %c0_i32 = arith.constant 0 : i32
    %c0_i32_0 = arith.constant 0 : i32
    %c0_i32_1 = arith.constant 0 : i32
    %c0_i32_2 = arith.constant 0 : i32
    return %c0_i32, %c0_i32_0, %c0_i32_1 : i32, i32, i32
  }
  func.func @transform_3(%arg0: i32, %arg1: i32) -> (i32, i32) {
    %c0_i32 = arith.constant 0 : i32
    %c0_i32_0 = arith.constant 0 : i32
    %c0_i32_1 = arith.constant 0 : i32
    return %c0_i32, %c0_i32_0 : i32, i32
  }
  func.func @transform_4(%arg0: i32, %arg1: i32) -> (i32, i32, i32, i32) {
    %c0_i32 = arith.constant 0 : i32
    %c0_i32_0 = arith.constant 0 : i32
    %c0_i32_1 = arith.constant 0 : i32
    return %arg0, %arg1, %c0_i32, %c0_i32_0 : i32, i32, i32, i32
  }
  func.func @transform_5(%arg0: i32, %arg1: i32) -> (i32, i32, i32, i32) {
    %c0_i32 = arith.constant 0 : i32
    %c0_i32_0 = arith.constant 0 : i32
    %c0_i32_1 = arith.constant 0 : i32
    return %arg0, %arg1, %c0_i32, %c0_i32_0 : i32, i32, i32, i32
  }
}

</mosaic_0001>

<bundles_post_ra>
// kernel: tpu_custom_call.1
= control target key start
LH: loop header
LB: loop body
LE: loop exit
PB: predicated region body
PF: predicated region fallthrough
CT: control target
= control target key end

     0   :  { %s4706_s18 = smov 0   ;;  %s4708_s19 = smov 0   ;;  %s6227_s0 = inlined_call_operand.vmem [shape: f32[2,16,16,4], index: 0, kind: input, shape index: {}]   ;;  %s6228_s1 = inlined_call_operand.vmem [shape: f32[2,16,16,4], index: 1, kind: input, shape index: {}]   ;;  %s6229_s2 = inlined_call_operand.vmem [shape: f32[4,4,4], index: 2, kind: input, shape index: {}]   ;;  %s6230_s3 = inlined_call_operand.vmem [shape: f32[10,4], index: 3, kind: input, shape index: {}]   ;;  %s6231_s4 = inlined_call_operand.vmem [shape: f32[2,16,16,4], index: 4, kind: output, shape index: {0}]   ;;  %s6232_s5 = inlined_call_operand.vmem [shape: f32[2,16,16,4], index: 5, kind: output, shape index: {1}]  }
   0x1   :  { %s4710_s20 = smov 0   ;;  %s4712_s21 = smov 0  }
   0x2   :  { %s4714_s22 = smov 0  }
   0x3 LB: > { %s25_s23 = sadd.s32 1, %s4664_s20  ;;  %s28_s24 = sadd.s32 1, %s4668_s21  ;;  %s4672_s22 = sphi %s4714_s22, %s16_s22   ;;  %s4668_s21 = sphi %s4712_s21, %s6280_s21   ;;  %s4664_s20 = sphi %s4710_s20, %s6279_s20   ;;  %s4660_s19 = sphi %s4708_s19, %s6278_s19   ;;  %s4656_s18 = sphi %s4706_s18, %s6277_s18  }
   0x4   : > { %p26_p0 = scmp.ge.s32.totalorder %s25_s23, 2  ;;  %p3776_p1 = scmp.ge.s32.totalorder %s4672_s22, 1 }
   0x5   : > { %p232_p2 = scmp.lt.s32.totalorder %s4672_s22, 5 }
   0x6   : > { %s6282_s23 = smov (%p26_p0, %s25_s23), 0  ;;  %s6284_s24 = smov (!%p26_p0, %s28_s24), %s4668_s21 }
   0x7   : > { %p233_p3 = pnand %p3776_p1, %p232_p2  ;;  %p30_p4 = scmp.ge.s32.totalorder %s6284_s24, 2 }
   0x9   : > { %s6286_s24 = smov (%p30_p4, %s6284_s24), 0  ;;  %236 = sbr.rel (%p233_p3) target bundleno = 1930 (0x78a), region = 36 }
  0x10   : > { %s3777_s25 = sshll.u32 %s4656_s18, 3  ;;  %p291_p5 = scmp.lt.s32.totalorder %s4660_s19, 1  ;;  %vm377_vm0 = vcmask 31744   ;;  %vm928_vm1 = vcmask 1043456   ;;  %vm4675_vm2 = vmmov 0   ;;  %vm2091_vm3 = vcmask 130048  }
  0x11   : > { %p293_p6 = scmp.lt.s32.totalorder %s3777_s25, 15 }
  0x12   : > { %s6288_s19 = smov (!%p291_p5, %s4660_s19), 1 }
  0x13   : > { %s6290_s25 = smov (!%p293_p6, %s3777_s25), 15  ;;  %s3779_s26 = sshll.u32 %s6288_s19, 5 }
  0x14   : > { %s3778_s27 = sshll.u32 %s6290_s25, 1 }
  0x15   : > { %s297_s28 = sadd.s32 %s3779_s26, %s3778_s27 }
  0x16   : > { %s4736_s29 = sshll.u32 %s297_s28, 3 }
  0x17   : > { %s4742_s7 = scalar_lea.vmem %s6228_s1, %s4736_s29  ;;  %s4764_s10 = scalar_lea.vmem %s6227_s0, %s4736_s29 }
  0x18   : > { %v4745_v0 = vld [vmem:[%s4742_s7] sm:$0xff]  ;;  %v4748_v1 = vld [vmem:[%s4742_s7 + $0x10] sm:$0xff]  ;;  %v4751_v2 = vld [vmem:[%s4742_s7 + $0x8] sm:$0xff]  ;;  %s5870_s27 = scalar_lea.vmem %s6231_s4, %s4736_s29  ;;  %s6147_s8 = scalar_lea.vmem %s6232_s5, %s4736_s29 }
  0x19   : > { %v627_v3 = vsel %vm377_vm0, %v4745_v0, 0.0  ;;  %v633_v4 = vsel %vm377_vm0, %v4748_v1, 0.0  ;;  %v4758_v5 = vld [vmem:[%s4742_s7 + $0x18] sm:$0xff]  ;;  %v630_v6 = vsel %vm377_vm0, %v4751_v2, 0.0  ;;  %v4771_v8 = vld [vmem:[%s4764_s10] sm:$0xff]  ;;  %v4781_v12 = vld [vmem:[%s4764_s10 + $0x8] sm:$0xff] }
  0x1a   : > { %628 = vadd.xlane.f32.xlu0 %v627_v3  ;;  %634 = vadd.xlane.f32.xlu1 %v633_v4  ;;  %v636_v7 = vsel %vm377_vm0, %v4758_v5, 0.0  ;;  %v4774_v9 = vld [vmem:[%s4742_s7 + $0x20] sm:$0xff]  ;;  %v378_v10 = vsel %vm377_vm0, %v4771_v8, 0.0  ;;  %v4784_v13 = vld [vmem:[%s4742_s7 + $0x28] sm:$0xff]  ;;  %v381_v14 = vsel %vm377_vm0, %v4781_v12, 0.0  ;;  %v4791_v16 = vld [vmem:[%s4764_s10 + $0x10] sm:$0xff] }
  0x1b   : > { %v639_v11 = vsel %vm377_vm0, %v4774_v9, 0.0  ;;  %v642_v15 = vsel %vm377_vm0, %v4784_v13, 0.0  ;;  %v4794_v17 = vld [vmem:[%s4742_s7 + $0x30] sm:$0xff]  ;;  %v384_v18 = vsel %vm377_vm0, %v4791_v16, 0.0  ;;  %v4801_v20 = vld [vmem:[%s4764_s10 + $0x18] sm:$0xff]  ;;  %v4811_v24 = vld [vmem:[%s4764_s10 + $0x20] sm:$0xff] }
  0x1c   : > { %v645_v19 = vsel %vm377_vm0, %v4794_v17, 0.0  ;;  %v4804_v21 = vld [vmem:[%s4742_s7 + $0x38] sm:$0xff]  ;;  %v387_v22 = vsel %vm377_vm0, %v4801_v20, 0.0  ;;  %v4814_v25 = vld [vmem:[%s4742_s7 + $0x40] sm:$0xff]  ;;  %v390_v26 = vsel %vm377_vm0, %v4811_v24, 0.0  ;;  %v4821_v28 = vld [vmem:[%s4764_s10 + $0x28] sm:$0xff] }
  0x1d   : > { %v648_v23 = vsel %vm377_vm0, %v4804_v21, 0.0  ;;  %v651_v27 = vsel %vm377_vm0, %v4814_v25, 0.0  ;;  %v4824_v29 = vld [vmem:[%s4742_s7 + $0x48] sm:$0xff]  ;;  %v393_v30 = vsel %vm377_vm0, %v4821_v28, 0.0  ;;  %v4831_v32 = vld [vmem:[%s4764_s10 + $0x30] sm:$0xff]  ;;  %v4841_v36 = vld [vmem:[%s4764_s10 + $0x38] sm:$0xff] }
  0x1e   : > { %631 = vadd.xlane.f32.xlu0 %v630_v6  ;;  %637 = vadd.xlane.f32.xlu1 %v636_v7  ;;  %v654_v31 = vsel %vm377_vm0, %v4824_v29, 0.0  ;;  %v4834_v33 = vld [vmem:[%s4742_s7 + $0x50] sm:$0xff]  ;;  %v396_v34 = vsel %vm377_vm0, %v4831_v32, 0.0  ;;  %v4844_v37 = vld [vmem:[%s4742_s7 + $0x58] sm:$0xff]  ;;  %v399_v38 = vsel %vm377_vm0, %v4841_v36, 0.0  ;;  %v4851_v40 = vld [vmem:[%s4764_s10 + $0x40] sm:$0xff] }
  0x1f   : > { %v657_v35 = vsel %vm377_vm0, %v4834_v33, 0.0  ;;  %v660_v39 = vsel %vm377_vm0, %v4844_v37, 0.0  ;;  %v4854_v41 = vld [vmem:[%s4742_s7 + $0x60] sm:$0xff]  ;;  %v402_v42 = vsel %vm377_vm0, %v4851_v40, 0.0  ;;  %v4861_v44 = vld [vmem:[%s4764_s10 + $0x48] sm:$0xff]  ;;  %v4871_v48 = vld [vmem:[%s4764_s10 + $0x50] sm:$0xff] }
  0x20   : > { %v663_v43 = vsel %vm377_vm0, %v4854_v41, 0.0  ;;  %v4864_v45 = vld [vmem:[%s4742_s7 + $0x68] sm:$0xff]  ;;  %v405_v46 = vsel %vm377_vm0, %v4861_v44, 0.0  ;;  %v4874_v49 = vld [vmem:[%s4742_s7 + $0x70] sm:$0xff]  ;;  %v408_v50 = vsel %vm377_vm0, %v4871_v48, 0.0  ;;  %v4881_v52 = vld [vmem:[%s4764_s10 + $0x58] sm:$0xff] }
  0x21   : > { %v666_v47 = vsel %vm377_vm0, %v4864_v45, 0.0  ;;  %v669_v51 = vsel %vm377_vm0, %v4874_v49, 0.0  ;;  %v4884_v53 = vld [vmem:[%s4742_s7 + $0x78] sm:$0xff]  ;;  %v411_v54 = vsel %vm377_vm0, %v4881_v52, 0.0  ;;  %v4891_v56 = vld [vmem:[%s4764_s10 + $0x60] sm:$0xff]  ;;  %v4894_v57 = vld [vmem:[%s4764_s10 + $0x68] sm:$0xff] }
  0x22   : > { %379 = vadd.xlane.f32.xlu0 %v378_v10  ;;  %640 = vadd.xlane.f32.xlu1 %v639_v11  ;;  %v672_v55 = vsel %vm377_vm0, %v4884_v53, 0.0  ;;  %v414_v58 = vsel %vm377_vm0, %v4891_v56, 0.0  ;;  %v417_v59 = vsel %vm377_vm0, %v4894_v57, 0.0  ;;  %v4901_v60 = vld [vmem:[%s4764_s10 + $0x70] sm:$0xff]  ;;  %v4904_v61 = vld [vmem:[%s4764_s10 + $0x78] sm:$0xff] }
  0x23   : > { %v420_v62 = vsel %vm377_vm0, %v4901_v60, 0.0  ;;  %v423_v63 = vsel %vm377_vm0, %v4904_v61, 0.0 }
  0x26   : > { %382 = vadd.xlane.f32.xlu0 %v381_v14  ;;  %643 = vadd.xlane.f32.xlu1 %v642_v15 }
  0x2a   : > { %385 = vadd.xlane.f32.xlu0 %v384_v18  ;;  %646 = vadd.xlane.f32.xlu1 %v645_v19 }
  0x2e   : > { %388 = vadd.xlane.f32.xlu0 %v387_v22  ;;  %649 = vadd.xlane.f32.xlu1 %v648_v23 }
  0x32   : > { %391 = vadd.xlane.f32.xlu0 %v390_v26  ;;  %652 = vadd.xlane.f32.xlu1 %v651_v27 }
  0x36   : > { %394 = vadd.xlane.f32.xlu0 %v393_v30  ;;  %655 = vadd.xlane.f32.xlu1 %v654_v31 }
  0x3a   : > { %397 = vadd.xlane.f32.xlu0 %v396_v34  ;;  %658 = vadd.xlane.f32.xlu1 %v657_v35 }
  0x3e   : > { %400 = vadd.xlane.f32.xlu0 %v399_v38  ;;  %661 = vadd.xlane.f32.xlu1 %v660_v39 }
  0x42   : > { %403 = vadd.xlane.f32.xlu0 %v402_v42  ;;  %664 = vadd.xlane.f32.xlu1 %v663_v43 }
  0x46   : > { %406 = vadd.xlane.f32.xlu0 %v405_v46  ;;  %667 = vadd.xlane.f32.xlu1 %v666_v47 }
  0x4a   : > { %409 = vadd.xlane.f32.xlu0 %v408_v50  ;;  %670 = vadd.xlane.f32.xlu1 %v669_v51 }
  0x4e   : > { %412 = vadd.xlane.f32.xlu0 %v411_v54  ;;  %673 = vadd.xlane.f32.xlu1 %v672_v55 }
  0x52   : > { %415 = vadd.xlane.f32.xlu0 %v414_v58  ;;  %418 = vadd.xlane.f32.xlu1 %v417_v59 }
  0x56   : > { %421 = vadd.xlane.f32.xlu0 %v420_v62  ;;  %424 = vadd.xlane.f32.xlu1 %v423_v63 }
  0xa7   : > { %v629_v3 = vpop.xlane.xlu0 %628  ;;  %v635_v4 = vpop.xlane.xlu1 %634 }
  0xa8   : > { %v675_v6 = vmul.f32 0.25, %v629_v3  ;;  %v677_v7 = vmul.f32 0.25, %v635_v4 }
  0xaa   : > { %v4911_v10 = vsub.f32 %v4745_v0, %v675_v6  ;;  %v4914_v11 = vsub.f32 %v4748_v1, %v677_v7 }
  0xab   : > { %v632_v14 = vpop.xlane.xlu0 %631  ;;  %v638_v15 = vpop.xlane.xlu1 %637 }
  0xac   : > { %v676_v18 = vmul.f32 0.25, %v632_v14  ;;  %v678_v19 = vmul.f32 0.25, %v638_v15  ;;  %v707_v22 = vmul.f32 %v4911_v10, %v4911_v10  ;;  %v709_v23 = vmul.f32 %v4914_v11, %v4914_v11 }
  0xae   : > { %v4921_v26 = vsub.f32 %v4751_v2, %v676_v18  ;;  %v4924_v27 = vsub.f32 %v4758_v5, %v678_v19  ;;  %v723_v0 = vsel %vm377_vm0, %v707_v22, 0.0  ;;  %v729_v31 = vsel %vm377_vm0, %v709_v23, 0.0 }
  0xaf   : > { %724 = vadd.xlane.f32.xlu0 %v723_v0  ;;  %v380_v1 = vpop.xlane.xlu0 %379  ;;  %v641_v30 = vpop.xlane.xlu1 %640 }
  0xb0   : > { %v427_v34 = vmul.f32 0.25, %v380_v1  ;;  %v679_v35 = vmul.f32 0.25, %v641_v30  ;;  %v708_v38 = vmul.f32 %v4921_v26, %v4921_v26  ;;  %v710_v39 = vmul.f32 %v4924_v27, %v4924_v27 }
  0xb2   : > { %v4933_v2 = vsub.f32 %v4771_v8, %v427_v34  ;;  %v4936_v5 = vsub.f32 %v4774_v9, %v679_v35  ;;  %v726_v42 = vsel %vm377_vm0, %v708_v38, 0.0  ;;  %v732_v47 = vsel %vm377_vm0, %v710_v39, 0.0 }
  0xb3   : > { %727 = vadd.xlane.f32.xlu1 %v726_v42  ;;  %730 = vadd.xlane.f32.xlu0 %v729_v31  ;;  %v383_v43 = vpop.xlane.xlu0 %382  ;;  %v644_v46 = vpop.xlane.xlu1 %643 }
  0xb4   : > { %v428_v50 = vmul.f32 0.25, %v383_v43  ;;  %v680_v51 = vmul.f32 0.25, %v644_v46  ;;  %v459_v54 = vmul.f32 %v4933_v2, %v4933_v2  ;;  %v711_v8 = vmul.f32 %v4936_v5, %v4936_v5 }
  0xb6   : > { %v4945_v55 = vsub.f32 %v4781_v12, %v428_v50  ;;  %v4948_v9 = vsub.f32 %v4784_v13, %v680_v51  ;;  %v475_v58 = vsel %vm377_vm0, %v459_v54, 0.0  ;;  %v735_v63 = vsel %vm377_vm0, %v711_v8, 0.0 }
  0xb7   : > { %733 = vadd.xlane.f32.xlu1 %v732_v47  ;;  %476 = vadd.xlane.f32.xlu0 %v475_v58  ;;  %v386_v59 = vpop.xlane.xlu0 %385  ;;  %v647_v62 = vpop.xlane.xlu1 %646 }
  0xb8   : > { %v429_v3 = vmul.f32 0.25, %v386_v59  ;;  %v681_v4 = vmul.f32 0.25, %v647_v62  ;;  %v460_v6 = vmul.f32 %v4945_v55, %v4945_v55  ;;  %v712_v12 = vmul.f32 %v4948_v9, %v4948_v9 }
  0xba   : > { %v4957_v7 = vsub.f32 %v4791_v16, %v429_v3  ;;  %v4960_v13 = vsub.f32 %v4794_v17, %v681_v4  ;;  %v478_v14 = vsel %vm377_vm0, %v460_v6, 0.0  ;;  %v738_v19 = vsel %vm377_vm0, %v712_v12, 0.0 }
  0xbb   : > { %736 = vadd.xlane.f32.xlu1 %v735_v63  ;;  %479 = vadd.xlane.f32.xlu0 %v478_v14  ;;  %v389_v15 = vpop.xlane.xlu0 %388  ;;  %v650_v18 = vpop.xlane.xlu1 %649 }
  0xbc   : > { %v430_v22 = vmul.f32 0.25, %v389_v15  ;;  %v682_v23 = vmul.f32 0.25, %v650_v18  ;;  %v461_v0 = vmul.f32 %v4957_v7, %v4957_v7  ;;  %v713_v16 = vmul.f32 %v4960_v13, %v4960_v13 }
  0xbe   : > { %v4969_v1 = vsub.f32 %v4801_v20, %v430_v22  ;;  %v4972_v17 = vsub.f32 %v4804_v21, %v682_v23  ;;  %v481_v30 = vsel %vm377_vm0, %v461_v0, 0.0  ;;  %v741_v35 = vsel %vm377_vm0, %v713_v16, 0.0 }
  0xbf   : > { %739 = vadd.xlane.f32.xlu1 %v738_v19  ;;  %482 = vadd.xlane.f32.xlu0 %v481_v30  ;;  %v392_v31 = vpop.xlane.xlu0 %391  ;;  %v653_v34 = vpop.xlane.xlu1 %652 }
  0xc0   : > { %v431_v38 = vmul.f32 0.25, %v392_v31  ;;  %v683_v39 = vmul.f32 0.25, %v653_v34  ;;  %v462_v42 = vmul.f32 %v4969_v1, %v4969_v1  ;;  %v714_v20 = vmul.f32 %v4972_v17, %v4972_v17 }
  0xc2   : > { %v4981_v43 = vsub.f32 %v4811_v24, %v431_v38  ;;  %v4984_v21 = vsub.f32 %v4814_v25, %v683_v39  ;;  %v484_v46 = vsel %vm377_vm0, %v462_v42, 0.0  ;;  %v744_v51 = vsel %vm377_vm0, %v714_v20, 0.0 }
  0xc3   : > { %742 = vadd.xlane.f32.xlu1 %v741_v35  ;;  %485 = vadd.xlane.f32.xlu0 %v484_v46  ;;  %v395_v47 = vpop.xlane.xlu0 %394  ;;  %v656_v50 = vpop.xlane.xlu1 %655 }
  0xc4   : > { %v432_v54 = vmul.f32 0.25, %v395_v47  ;;  %v684_v8 = vmul.f32 0.25, %v656_v50  ;;  %v463_v58 = vmul.f32 %v4981_v43, %v4981_v43  ;;  %v715_v24 = vmul.f32 %v4984_v21, %v4984_v21 }
  0xc6   : > { %v4993_v59 = vsub.f32 %v4821_v28, %v432_v54  ;;  %v4996_v25 = vsub.f32 %v4824_v29, %v684_v8  ;;  %v487_v62 = vsel %vm377_vm0, %v463_v58, 0.0  ;;  %v747_v4 = vsel %vm377_vm0, %v715_v24, 0.0 }
  0xc7   : > { %745 = vadd.xlane.f32.xlu1 %v744_v51  ;;  %488 = vadd.xlane.f32.xlu0 %v487_v62  ;;  %v398_v63 = vpop.xlane.xlu0 %397  ;;  %v659_v3 = vpop.xlane.xlu1 %658 }
  0xc8   : > { %v433_v6 = vmul.f32 0.25, %v398_v63  ;;  %v685_v12 = vmul.f32 0.25, %v659_v3  ;;  %v464_v14 = vmul.f32 %v4993_v59, %v4993_v59  ;;  %v716_v28 = vmul.f32 %v4996_v25, %v4996_v25 }
  0xca   : > { %v5005_v15 = vsub.f32 %v4831_v32, %v433_v6  ;;  %v5008_v29 = vsub.f32 %v4834_v33, %v685_v12  ;;  %v490_v18 = vsel %vm377_vm0, %v464_v14, 0.0  ;;  %v750_v23 = vsel %vm377_vm0, %v716_v28, 0.0 }
  0xcb   : > { %748 = vadd.xlane.f32.xlu1 %v747_v4  ;;  %491 = vadd.xlane.f32.xlu0 %v490_v18  ;;  %v401_v19 = vpop.xlane.xlu0 %400  ;;  %v662_v22 = vpop.xlane.xlu1 %661 }
  0xcc   : > { %v434_v0 = vmul.f32 0.25, %v401_v19  ;;  %v686_v16 = vmul.f32 0.25, %v662_v22  ;;  %v465_v30 = vmul.f32 %v5005_v15, %v5005_v15  ;;  %v717_v32 = vmul.f32 %v5008_v29, %v5008_v29 }
  0xce   : > { %v5017_v31 = vsub.f32 %v4841_v36, %v434_v0  ;;  %v5020_v33 = vsub.f32 %v4844_v37, %v686_v16  ;;  %v493_v34 = vsel %vm377_vm0, %v465_v30, 0.0  ;;  %v753_v39 = vsel %vm377_vm0, %v717_v32, 0.0 }
  0xcf   : > { %751 = vadd.xlane.f32.xlu1 %v750_v23  ;;  %494 = vadd.xlane.f32.xlu0 %v493_v34  ;;  %v404_v35 = vpop.xlane.xlu0 %403  ;;  %v665_v38 = vpop.xlane.xlu1 %664 }
  0xd0   : > { %v435_v42 = vmul.f32 0.25, %v404_v35  ;;  %v687_v20 = vmul.f32 0.25, %v665_v38  ;;  %v466_v46 = vmul.f32 %v5017_v31, %v5017_v31  ;;  %v718_v36 = vmul.f32 %v5020_v33, %v5020_v33 }
  0xd2   : > { %v5029_v47 = vsub.f32 %v4851_v40, %v435_v42  ;;  %v5032_v37 = vsub.f32 %v4854_v41, %v687_v20  ;;  %v496_v50 = vsel %vm377_vm0, %v466_v46, 0.0  ;;  %v756_v8 = vsel %vm377_vm0, %v718_v36, 0.0  ;;  %v3815_v41 = vld [vmem:[%s6229_s2 + $0x4] sm:$0xf] }
  0xd3   : > { %754 = vadd.xlane.f32.xlu1 %v753_v39  ;;  %497 = vadd.xlane.f32.xlu0 %v496_v50  ;;  %v407_v51 = vpop.xlane.xlu0 %406  ;;  %v668_v54 = vpop.xlane.xlu1 %667 }
  0xd4   : > { %v436_v58 = vmul.f32 0.25, %v407_v51  ;;  %v688_v24 = vmul.f32 0.25, %v668_v54  ;;  %v467_v62 = vmul.f32 %v5029_v47, %v5029_v47  ;;  %v719_v40 = vmul.f32 %v5032_v37, %v5032_v37  ;;  %4066 = vmatprep.subr.msk.mxu1 %vm928_vm1, %v3815_v41 }
  0xd5   : > { %4067 = vmatpush3.msk.msra.mxu1 %vm928_vm1, %v3815_v41 }
  0xd6   : > { %v5044_v63 = vsub.f32 %v4861_v44, %v436_v58  ;;  %v5047_v3 = vsub.f32 %v4864_v45, %v688_v24  ;;  %v499_v4 = vsel %vm377_vm0, %v467_v62, 0.0  ;;  %v759_v14 = vsel %vm377_vm0, %v719_v40, 0.0 }
  0xd7   : > { %757 = vadd.xlane.f32.xlu1 %v756_v8  ;;  %500 = vadd.xlane.f32.xlu0 %v499_v4  ;;  %v410_v6 = vpop.xlane.xlu0 %409  ;;  %v671_v12 = vpop.xlane.xlu1 %670 }
  0xd8   : > { %v437_v28 = vmul.f32 0.25, %v410_v6  ;;  %v689_v18 = vmul.f32 0.25, %v671_v12  ;;  %v468_v19 = vmul.f32 %v5044_v63, %v5044_v63  ;;  %v720_v44 = vmul.f32 %v5047_v3, %v5047_v3 }
  0xda   : > { %v5058_v45 = vsub.f32 %v4871_v48, %v437_v28  ;;  %v5061_v22 = vsub.f32 %v4874_v49, %v689_v18  ;;  %v502_v23 = vsel %vm377_vm0, %v468_v19, 0.0  ;;  %v762_v30 = vsel %vm377_vm0, %v720_v44, 0.0  ;;  %v875_v49 = vld [vmem:[%s6229_s2] sm:$0xf] }
  0xdb   : > { %760 = vadd.xlane.f32.xlu1 %v759_v14  ;;  %503 = vadd.xlane.f32.xlu0 %v502_v23  ;;  %v413_v0 = vpop.xlane.xlu0 %412  ;;  %v674_v16 = vpop.xlane.xlu1 %673  ;;  %v5120_v23 = vld [vmem:[%s6229_s2 + $0xc] sm:$0xf] }
  0xdc   : > { %v438_v32 = vmul.f32 0.25, %v413_v0  ;;  %v690_v34 = vmul.f32 0.25, %v674_v16  ;;  %v469_v35 = vmul.f32 %v5058_v45, %v5058_v45  ;;  %v721_v48 = vmul.f32 %v5061_v22, %v5061_v22  ;;  %4040 = vmatprep.subr.msk.mxu0 %vm928_vm1, %v875_v49  ;;  %4118 = vmatprep.subr.msk.mxu1 %vm928_vm1, %v5120_v23 }
  0xdd   : > { %4041 = vmatpush3.msk.msra.mxu0 %vm928_vm1, %v875_v49 }
  0xde   : > { %v5073_v38 = vsub.f32 %v4881_v52, %v438_v32  ;;  %v5076_v39 = vsub.f32 %v4884_v53, %v690_v34  ;;  %v505_v42 = vsel %vm377_vm0, %v469_v35, 0.0  ;;  %v765_v46 = vsel %vm377_vm0, %v721_v48, 0.0 }
  0xdf   : > { %763 = vadd.xlane.f32.xlu1 %v762_v30  ;;  %506 = vadd.xlane.f32.xlu0 %v505_v42  ;;  %v416_v20 = vpop.xlane.xlu0 %415  ;;  %v419_v36 = vpop.xlane.xlu1 %418 }
  0xe0   : > { %v439_v50 = vmul.f32 0.25, %v416_v20  ;;  %v440_v51 = vmul.f32 0.25, %v419_v36  ;;  %v470_v54 = vmul.f32 %v5073_v38, %v5073_v38  ;;  %v722_v52 = vmul.f32 %v5076_v39, %v5076_v39 }
  0xe2   : > { %v5087_v53 = vsub.f32 %v4891_v56, %v439_v50  ;;  %v5090_v8 = vsub.f32 %v4894_v57, %v440_v51  ;;  %v508_v58 = vsel %vm377_vm0, %v470_v54, 0.0  ;;  %v768_v62 = vsel %vm377_vm0, %v722_v52, 0.0 }
  0xe3   : > { %766 = vadd.xlane.f32.xlu1 %v765_v46  ;;  %509 = vadd.xlane.f32.xlu0 %v508_v58  ;;  %v422_v24 = vpop.xlane.xlu0 %421  ;;  %v425_v40 = vpop.xlane.xlu1 %424 }
  0xe4   : > { %v441_v41 = vmul.f32 0.25, %v422_v24  ;;  %v442_v4 = vmul.f32 0.25, %v425_v40  ;;  %v471_v6 = vmul.f32 %v5087_v53, %v5087_v53  ;;  %v472_v56 = vmul.f32 %v5090_v8, %v5090_v8 }
  0xe6   : > { %v5099_v12 = vsub.f32 %v4901_v60, %v441_v41  ;;  %v5102_v57 = vsub.f32 %v4904_v61, %v442_v4  ;;  %v511_v14 = vsel %vm377_vm0, %v471_v6, 0.0  ;;  %v514_v28 = vsel %vm377_vm0, %v472_v56, 0.0  ;;  %v5115_v61 = vld [vmem:[%s6229_s2 + $0x8] sm:$0xf]  ;;  %v5129_v6 = vld [vmem:[%s6230_s3 + $0x2] ss:$0 sm:$0xff] }
  0xe7   : > { %769 = vadd.xlane.f32.xlu1 %v768_v62  ;;  %512 = vadd.xlane.f32.xlu0 %v511_v14 }
  0xe8   : > { %v473_v18 = vmul.f32 %v5099_v12, %v5099_v12  ;;  %v474_v19 = vmul.f32 %v5102_v57, %v5102_v57  ;;  %4092 = vmatprep.subr.msk.mxu0 %vm928_vm1, %v5115_v61 }
  0xea   : > { %v517_v44 = vsel %vm377_vm0, %v473_v18, 0.0  ;;  %v520_v60 = vsel %vm377_vm0, %v474_v19, 0.0 }
  0xeb   : > { %515 = vadd.xlane.f32.xlu1 %v514_v28  ;;  %518 = vadd.xlane.f32.xlu0 %v517_v44  ;;  %v5135_v44 = vld [vmem:[%s6230_s3 + $0x3] ss:$0 sm:$0xff] }
  0xef   : > { %521 = vadd.xlane.f32.xlu1 %v520_v60 }
 0x13c   : > { %v725_v0 = vpop.xlane.xlu0 %724 }
 0x13d   : > { %v771_v16 = vmul.f32 0.25, %v725_v0 }
 0x13f   : > { %v787_v30 = vadd.f32 1e-05, %v771_v16 }
 0x140   : > { %v728_v32 = vpop.xlane.xlu1 %727  ;;  %v731_v34 = vpop.xlane.xlu0 %730 }
 0x141   : > { %4378 = vrsqrt.f32 %v787_v30  ;;  %v772_v35 = vmul.f32 0.25, %v728_v32  ;;  %v773_v48 = vmul.f32 0.25, %v731_v34 }
 0x143   : > { %v788_v49 = vadd.f32 1e-05, %v772_v35  ;;  %v789_v42 = vadd.f32 1e-05, %v773_v48 }
 0x144   : > { %v734_v20 = vpop.xlane.xlu1 %733  ;;  %v477_v46 = vpop.xlane.xlu0 %476 }
 0x145   : > { %4380 = vrsqrt.f32 %v788_v49  ;;  %v774_v36 = vmul.f32 0.25, %v734_v20  ;;  %v523_v50 = vmul.f32 0.25, %v477_v46 }
 0x146   : > { %4382 = vrsqrt.f32 %v789_v42 }
 0x147   : > { %v790_v51 = vadd.f32 1e-05, %v774_v36  ;;  %v539_v54 = vadd.f32 1e-05, %v523_v50 }
 0x148   : > { %v737_v52 = vpop.xlane.xlu1 %736  ;;  %v480_v58 = vpop.xlane.xlu0 %479 }
 0x149   : > { %4384 = vrsqrt.f32 %v790_v51  ;;  %v775_v24 = vmul.f32 0.25, %v737_v52  ;;  %v524_v62 = vmul.f32 0.25, %v480_v58 }
 0x14a   : > { %4386 = vrsqrt.f32 %v539_v54 }
 0x14b   : > { %v4379_v40 = vpop.eup %4378  ;;  %v791_v41 = vadd.f32 1e-05, %v775_v24  ;;  %v540_v4 = vadd.f32 1e-05, %v524_v62 }
 0x14c   : > { %v740_v56 = vpop.xlane.xlu1 %739  ;;  %v483_v14 = vpop.xlane.xlu0 %482  ;;  %v819_v28 = vmul.f32 %v4379_v40, %v4911_v10 }
 0x14d   : > { %4388 = vrsqrt.f32 %v791_v41  ;;  %v776_v18 = vmul.f32 0.25, %v740_v56  ;;  %v525_v19 = vmul.f32 0.25, %v483_v14 }
 0x14e   : > { %4390 = vrsqrt.f32 %v540_v4  ;;  %v839_v60 = vmul.f32 %v5129_v6, %v819_v28  ;;  %v5150_v4 = vld [vmem:[%s6230_s3] ss:$0 sm:$0xff] }
 0x14f   : > { %v4381_v0 = vpop.eup %4380  ;;  %v792_v16 = vadd.f32 1e-05, %v776_v18  ;;  %v541_v30 = vadd.f32 1e-05, %v525_v19  ;;  %v5159_v19 = vld [vmem:[%s6230_s3 + $0x1] ss:$0 sm:$0xff] }
 0x150   : > { %v4383_v32 = vpop.eup %4382  ;;  %v743_v34 = vpop.xlane.xlu1 %742  ;;  %v859_v48 = vadd.f32 %v5135_v44, %v839_v60  ;;  %v820_v10 = vmul.f32 %v4381_v0, %v4921_v26 }
 0x151   : > { %v486_v35 = vpop.xlane.xlu0 %485  ;;  %4392 = vrsqrt.f32 %v792_v16  ;;  %v777_v49 = vmul.f32 0.25, %v743_v34  ;;  %v821_v20 = vmul.f32 %v4383_v32, %v4914_v11 }
 0x152   : > { %v526_v42 = vmul.f32 0.25, %v486_v35  ;;  %4394 = vrsqrt.f32 %v541_v30  ;;  %4068 = vmatprep.mubr.msk.f32.mxu1 %vm377_vm0, %v859_v48  ;;  %v840_v46 = vmul.f32 %v5129_v6, %v820_v10 }
 0x153   : > { %v4385_v36 = vpop.eup %4384  ;;  %v793_v50 = vadd.f32 1e-05, %v777_v49  ;;  %v841_v54 = vmul.f32 %v5129_v6, %v821_v20 }
 0x154   : > { %v542_v51 = vadd.f32 1e-05, %v526_v42  ;;  %v4387_v52 = vpop.eup %4386  ;;  %v746_v58 = vpop.xlane.xlu1 %745  ;;  %v860_v26 = vadd.f32 %v5135_v44, %v840_v46  ;;  %v822_v62 = vmul.f32 %v4385_v36, %v4924_v27 }
 0x155   : > { %v489_v24 = vpop.xlane.xlu0 %488  ;;  %4396 = vrsqrt.f32 %v793_v50  ;;  %v778_v40 = vmul.f32 0.25, %v746_v58  ;;  %v861_v41 = vadd.f32 %v5135_v44, %v841_v54  ;;  %v571_v56 = vmul.f32 %v4387_v52, %v4933_v2 }
 0x156   : > { %v527_v11 = vmul.f32 0.25, %v489_v24  ;;  %4398 = vrsqrt.f32 %v542_v51  ;;  %4069 = vmatmul.mubr.msk.f32.vlgmr.msra.gmra.mrb[0].mxu1 %vm377_vm0, %v860_v26  ;;  %v842_v14 = vmul.f32 %v5129_v6, %v822_v62 }
 0x157   : > { %v4389_v28 = vpop.eup %4388  ;;  %v794_v18 = vadd.f32 1e-05, %v778_v40  ;;  %4071 = vmatprep.mubr.msk.f32.mxu1 %vm377_vm0, %v861_v41  ;;  %4119 = vmatpush3.msk.msra.mxu1 %vm928_vm1, %v5120_v23  ;;  %v591_v2 = vmul.f32 %v5150_v4, %v571_v56 }
 0x158   : > { %v543_v27 = vadd.f32 1e-05, %v527_v11  ;;  %v4391_v60 = vpop.eup %4390  ;;  %v749_v0 = vpop.xlane.xlu1 %748  ;;  %v862_v30 = vadd.f32 %v5135_v44, %v842_v14  ;;  %v823_v32 = vmul.f32 %v4389_v28, %v4936_v5 }
 0x159   : > { %v492_v16 = vpop.xlane.xlu0 %491  ;;  %4400 = vrsqrt.f32 %v794_v18  ;;  %v779_v34 = vmul.f32 0.25, %v749_v0  ;;  %v572_v48 = vmul.f32 %v4391_v60, %v4945_v55  ;;  %v611_v10 = vadd.f32 %v5159_v19, %v591_v2 }
 0x15a   : > { %v528_v35 = vmul.f32 0.25, %v492_v16  ;;  %4402 = vrsqrt.f32 %v543_v27  ;;  %4072 = vmatmul.mubr.msk.f32.gmra.mrb[2].mxu1 %vm377_vm0, %v862_v30  ;;  %v843_v23 = vmul.f32 %v5129_v6, %v823_v32 }
 0x15b   : > { %v4393_v49 = vpop.eup %4392  ;;  %v795_v42 = vadd.f32 1e-05, %v779_v34  ;;  %v592_v46 = vmul.f32 %v5150_v4, %v572_v48  ;;  %4042 = vmatprep.mubr.msk.f32.mxu0 %vm377_vm0, %v611_v10 }
 0x15c   : > { %v544_v20 = vadd.f32 1e-05, %v528_v35  ;;  %v4395_v36 = vpop.eup %4394  ;;  %v752_v5 = vpop.xlane.xlu1 %751  ;;  %v863_v51 = vadd.f32 %v5135_v44, %v843_v23  ;;  %v824_v55 = vmul.f32 %v4393_v49, %v4948_v9 }
 0x15d   : > { %v495_v50 = vpop.xlane.xlu0 %494  ;;  %4404 = vrsqrt.f32 %v795_v42  ;;  %v780_v54 = vmul.f32 0.25, %v752_v5  ;;  %v612_v58 = vadd.f32 %v5159_v19, %v592_v46  ;;  %v573_v24 = vmul.f32 %v4395_v36, %v4957_v7 }
 0x15e   : > { %v529_v52 = vmul.f32 0.25, %v495_v50  ;;  %4406 = vrsqrt.f32 %v544_v20  ;;  %4074 = vmatprep.mubr.msk.f32.mxu1 %vm377_vm0, %v863_v51  ;;  %v844_v26 = vmul.f32 %v5129_v6, %v824_v55 }
 0x15f   : > { %v4397_v62 = vpop.eup %4396  ;;  %v796_v40 = vadd.f32 1e-05, %v780_v54  ;;  %4043 = vmatmul.mubr.msk.f32.vlgmr.msra.gmra.mrb[0].mxu0 %vm377_vm0, %v612_v58  ;;  %v593_v14 = vmul.f32 %v5150_v4, %v573_v24 }
 0x160   : > { %v545_v11 = vadd.f32 1e-05, %v529_v52  ;;  %v4399_v41 = vpop.eup %4398  ;;  %v755_v56 = vpop.xlane.xlu1 %754  ;;  %v864_v28 = vadd.f32 %v5135_v44, %v844_v26  ;;  %v825_v18 = vmul.f32 %v4397_v62, %v4960_v13  ;;  %4093 = vmatpush3.msk.msra.mxu0 %vm928_vm1, %v5115_v61 }
 0x161   : > { %v498_v9 = vpop.xlane.xlu0 %497  ;;  %4408 = vrsqrt.f32 %v796_v40  ;;  %v781_v7 = vmul.f32 0.25, %v755_v56  ;;  %v574_v60 = vmul.f32 %v4399_v41, %v4969_v1  ;;  %v613_v0 = vadd.f32 %v5159_v19, %v593_v14 }
 0x162   : > { %v530_v27 = vmul.f32 0.25, %v498_v9  ;;  %4410 = vrsqrt.f32 %v545_v11  ;;  %4075 = vmatmul.mubr.msk.f32.gmra.mrb[4].mxu1 %vm377_vm0, %v864_v28  ;;  %v845_v16 = vmul.f32 %v5129_v6, %v825_v18 }
 0x163   : > { %v4401_v2 = vpop.eup %4400  ;;  %v797_v30 = vadd.f32 1e-05, %v781_v7  ;;  %v594_v13 = vmul.f32 %v5150_v4, %v574_v60  ;;  %4045 = vmatprep.mubr.msk.f32.mxu0 %vm377_vm0, %v613_v0 }
 0x164   : > { %v546_v32 = vadd.f32 1e-05, %v530_v27  ;;  %v4403_v34 = vpop.eup %4402  ;;  %v758_v61 = vpop.xlane.xlu1 %757  ;;  %v865_v48 = vadd.f32 %v5135_v44, %v845_v16  ;;  %v826_v1 = vmul.f32 %v4401_v2, %v4972_v17 }
 0x165   : > { %v501_v35 = vpop.xlane.xlu0 %500  ;;  %4412 = vrsqrt.f32 %v797_v30  ;;  %v782_v10 = vmul.f32 0.25, %v758_v61  ;;  %v614_v49 = vadd.f32 %v5159_v19, %v594_v13  ;;  %v575_v42 = vmul.f32 %v4403_v34, %v4981_v43 }
 0x166   : > { %v531_v23 = vmul.f32 0.25, %v501_v35  ;;  %4414 = vrsqrt.f32 %v546_v32  ;;  %4077 = vmatprep.mubr.msk.f32.mxu1 %vm377_vm0, %v865_v48  ;;  %v846_v20 = vmul.f32 %v5129_v6, %v826_v1 }
 0x167   : > { %v4405_v46 = vpop.eup %4404  ;;  %v798_v36 = vadd.f32 1e-05, %v782_v10  ;;  %4046 = vmatmul.mubr.msk.f32.gmra.mrb[2].mxu0 %vm377_vm0, %v614_v49  ;;  %v595_v55 = vmul.f32 %v5150_v4, %v575_v42 }
 0x168   : > { %v547_v5 = vadd.f32 1e-05, %v531_v23  ;;  %v4407_v50 = vpop.eup %4406  ;;  %v761_v51 = vpop.xlane.xlu1 %760  ;;  %v866_v54 = vadd.f32 %v5135_v44, %v846_v20  ;;  %v827_v52 = vmul.f32 %v4405_v46, %v4984_v21 }
 0x169   : > { %v504_v17 = vpop.xlane.xlu0 %503  ;;  %4416 = vrsqrt.f32 %v798_v36  ;;  %v783_v58 = vmul.f32 0.25, %v761_v51  ;;  %v576_v43 = vmul.f32 %v4407_v50, %v4993_v59  ;;  %v615_v26 = vadd.f32 %v5159_v19, %v595_v55 }
 0x16a   : > { %v532_v24 = vmul.f32 0.25, %v504_v17  ;;  %4418 = vrsqrt.f32 %v547_v5  ;;  %4078 = vmatmul.mubr.msk.f32.gmra.mrb[6].mxu1 %vm377_vm0, %v866_v54  ;;  %v847_v62 = vmul.f32 %v5129_v6, %v827_v52 }
 0x16b   : > { %v4409_v40 = vpop.eup %4408  ;;  %v799_v11 = vadd.f32 1e-05, %v783_v58  ;;  %v596_v56 = vmul.f32 %v5150_v4, %v576_v43  ;;  %4048 = vmatprep.mubr.msk.f32.mxu0 %vm377_vm0, %v615_v26 }
 0x16c   : > { %v548_v41 = vadd.f32 1e-05, %v532_v24  ;;  %v4411_v9 = vpop.eup %4410  ;;  %v764_v21 = vpop.xlane.xlu1 %763  ;;  %v867_v28 = vadd.f32 %v5135_v44, %v847_v62  ;;  %v828_v59 = vmul.f32 %v4409_v40, %v4996_v25 }
 0x16d   : > { %v507_v14 = vpop.xlane.xlu0 %506  ;;  %4420 = vrsqrt.f32 %v799_v11  ;;  %v784_v18 = vmul.f32 0.25, %v764_v21  ;;  %v616_v27 = vadd.f32 %v5159_v19, %v596_v56  ;;  %v577_v60 = vmul.f32 %v4411_v9, %v5005_v15 }
 0x16e   : > { %v533_v7 = vmul.f32 0.25, %v507_v14  ;;  %4422 = vrsqrt.f32 %v548_v41  ;;  %4080 = vmatprep.mubr.msk.f32.mxu1 %vm377_vm0, %v867_v28  ;;  %v848_v0 = vmul.f32 %v5129_v6, %v828_v59 }
 0x16f   : > { %v4413_v16 = vpop.eup %4412  ;;  %v800_v2 = vadd.f32 1e-05, %v784_v18  ;;  %4049 = vmatmul.mubr.msk.f32.gmra.mrb[4].mxu0 %vm377_vm0, %v616_v27  ;;  %v597_v34 = vmul.f32 %v5150_v4, %v577_v60 }
 0x170   : > { %v549_v30 = vadd.f32 1e-05, %v533_v7  ;;  %v4415_v32 = vpop.eup %4414  ;;  %v767_v13 = vpop.xlane.xlu1 %766  ;;  %v868_v61 = vadd.f32 %v5135_v44, %v848_v0  ;;  %v829_v35 = vmul.f32 %v4413_v16, %v5008_v29 }
 0x171   : > { %v510_v25 = vpop.xlane.xlu0 %509  ;;  %4424 = vrsqrt.f32 %v800_v2  ;;  %v785_v48 = vmul.f32 0.25, %v767_v13  ;;  %v578_v15 = vmul.f32 %v4415_v32, %v5017_v31  ;;  %v617_v10 = vadd.f32 %v5159_v19, %v597_v34 }
 0x172   : > { %v534_v1 = vmul.f32 0.25, %v510_v25  ;;  %4426 = vrsqrt.f32 %v549_v30  ;;  %4081 = vmatmul.mubr.msk.f32.gmra.mrb[8].mxu1 %vm377_vm0, %v868_v61  ;;  %v849_v23 = vmul.f32 %v5129_v6, %v829_v35 }
 0x173   : > { %v4417_v49 = vpop.eup %4416  ;;  %v801_v42 = vadd.f32 1e-05, %v785_v48  ;;  %v598_v46 = vmul.f32 %v5150_v4, %v578_v15  ;;  %4051 = vmatprep.mubr.msk.f32.mxu0 %vm377_vm0, %v617_v10 }
 0x174   : > { %v550_v20 = vadd.f32 1e-05, %v534_v1  ;;  %v4419_v36 = vpop.eup %4418  ;;  %v770_v29 = vpop.xlane.xlu1 %769  ;;  %v869_v50 = vadd.f32 %v5135_v44, %v849_v23  ;;  %v830_v31 = vmul.f32 %v4417_v49, %v5020_v33 }
 0x175   : > { %v513_v5 = vpop.xlane.xlu0 %512  ;;  %4428 = vrsqrt.f32 %v801_v42  ;;  %v786_v51 = vmul.f32 0.25, %v770_v29  ;;  %v618_v55 = vadd.f32 %v5159_v19, %v598_v46  ;;  %v579_v54 = vmul.f32 %v4419_v36, %v5029_v47 }
 0x176   : > { %v535_v17 = vmul.f32 0.25, %v513_v5  ;;  %4430 = vrsqrt.f32 %v550_v20  ;;  %4083 = vmatprep.mubr.msk.f32.mxu1 %vm377_vm0, %v869_v50  ;;  %v850_v52 = vmul.f32 %v5129_v6, %v830_v31 }
 0x177   : > { %v4421_v58 = vpop.eup %4420  ;;  %v802_v24 = vadd.f32 1e-05, %v786_v51  ;;  %4052 = vmatmul.mubr.msk.f32.gmra.mrb[6].mxu0 %vm377_vm0, %v618_v55  ;;  %v599_v40 = vmul.f32 %v5150_v4, %v579_v54  ;;  %v4570_v51 = vld [vmem:[%s4742_s7] sm:$0xff]  ;;  %v4571_v55 = vld [vmem:[%s4742_s7 + $0x8] sm:$0xff]  ;;  %v4572_v54 = vld [vmem:[%s4742_s7 + $0x10] sm:$0xff] }
 0x178   : > { %v551_v43 = vadd.f32 1e-05, %v535_v17  ;;  %v4423_v26 = vpop.eup %4422  ;;  %v516_v62 = vpop.xlane.xlu1 %515  ;;  %v870_v11 = vadd.f32 %v5135_v44, %v850_v52  ;;  %v831_v41 = vmul.f32 %v4421_v58, %v5032_v37  ;;  %v4573_v52 = vld [vmem:[%s4742_s7 + $0x18] sm:$0xff]  ;;  %v4575_v58 = vld [vmem:[%s4742_s7 + $0x20] sm:$0xff] }
 0x179   : > { %v519_v33 = vpop.xlane.xlu0 %518  ;;  %4432 = vrsqrt.f32 %v802_v24  ;;  %v536_v56 = vmul.f32 0.25, %v516_v62  ;;  %v580_v47 = vmul.f32 %v4423_v26, %v5044_v63  ;;  %v619_v21 = vadd.f32 %v5159_v19, %v599_v40  ;;  %v4576_v24 = vld [vmem:[%s4764_s10 + $0x8] sm:$0xff]  ;;  %v4579_v26 = vld [vmem:[%s4742_s7 + $0x30] sm:$0xff]  ;;  %v4580_v62 = vld [vmem:[%s4764_s10 + $0x18] sm:$0xff] }
 0x17a   : > { %v537_v9 = vmul.f32 0.25, %v519_v33  ;;  %4434 = vrsqrt.f32 %v551_v43  ;;  %4084 = vmatmul.mubr.msk.f32.gmra.mrb[10].mxu1 %vm377_vm0, %v870_v11  ;;  %v851_v14 = vmul.f32 %v5129_v6, %v831_v41  ;;  %v4578_v43 = vld [vmem:[%s4764_s10 + $0x10] sm:$0xff]  ;;  %v4581_v33 = vld [vmem:[%s4742_s7 + $0x38] sm:$0xff]  ;;  %v4582_v40 = vld [vmem:[%s4764_s10 + $0x20] sm:$0xff] }
 0x17b   : > { %v4425_v28 = vpop.eup %4424  ;;  %v552_v59 = vadd.f32 1e-05, %v536_v56  ;;  %v600_v7 = vmul.f32 %v5150_v4, %v580_v47  ;;  %4054 = vmatprep.mubr.msk.f32.mxu0 %vm377_vm0, %v619_v21  ;;  %v4583_v11 = vld [vmem:[%s4742_s7 + $0x40] sm:$0xff]  ;;  %v4584_v41 = vld [vmem:[%s4764_s10 + $0x28] sm:$0xff]  ;;  %v4587_v47 = vld [vmem:[%s4742_s7 + $0x50] sm:$0xff] }
 0x17c   : > { %v553_v18 = vadd.f32 1e-05, %v537_v9  ;;  %v4427_v27 = vpop.eup %4426  ;;  %v522_v37 = vpop.xlane.xlu1 %521  ;;  %v871_v60 = vadd.f32 %v5135_v44, %v851_v14  ;;  %v832_v63 = vmul.f32 %v4425_v28, %v5047_v3  ;;  %v4585_v56 = vld [vmem:[%s4742_s7 + $0x48] sm:$0xff]  ;;  %v4586_v9 = vld [vmem:[%s4764_s10 + $0x30] sm:$0xff]  ;;  %v4588_v21 = vld [vmem:[%s4764_s10 + $0x38] sm:$0xff] }
 0x17d   : > { %4436 = vrsqrt.f32 %v552_v59  ;;  %v538_v0 = vmul.f32 0.25, %v522_v37  ;;  %v620_v16 = vadd.f32 %v5159_v19, %v600_v7  ;;  %v581_v2 = vmul.f32 %v4427_v27, %v5058_v45  ;;  %v4589_v14 = vld [vmem:[%s4742_s7 + $0x58] sm:$0xff]  ;;  %v4590_v28 = vld [vmem:[%s4764_s10 + $0x40] sm:$0xff]  ;;  %v4593_v7 = vld [vmem:[%s4742_s7 + $0x68] sm:$0xff] }
 0x17e   : > { %4438 = vrsqrt.f32 %v553_v18  ;;  %4086 = vmatprep.mubr.msk.f32.mxu1 %vm377_vm0, %v871_v60  ;;  %v852_v30 = vmul.f32 %v5129_v6, %v832_v63  ;;  %v4591_v59 = vld [vmem:[%s4742_s7 + $0x60] sm:$0xff]  ;;  %v4592_v18 = vld [vmem:[%s4764_s10 + $0x48] sm:$0xff]  ;;  %v4594_v27 = vld [vmem:[%s4764_s10 + $0x50] sm:$0xff] }
 0x17f   : > { %v4429_v32 = vpop.eup %4428  ;;  %v554_v13 = vadd.f32 1e-05, %v538_v0  ;;  %4055 = vmatmul.mubr.msk.f32.gmra.mrb[8].mxu0 %vm377_vm0, %v620_v16  ;;  %v601_v25 = vmul.f32 %v5150_v4, %v581_v2  ;;  %v4595_v37 = vld [vmem:[%s4742_s7 + $0x70] sm:$0xff]  ;;  %v4596_v60 = vld [vmem:[%s4764_s10 + $0x58] sm:$0xff]  ;;  %v4598_v0 = vld [vmem:[%s4764_s10 + $0x60] sm:$0xff] }
 0x180   : > { %v4431_v34 = vpop.eup %4430  ;;  %v872_v3 = vadd.f32 %v5135_v44, %v852_v30  ;;  %v833_v61 = vmul.f32 %v4429_v32, %v5061_v22  ;;  %v4597_v63 = vld [vmem:[%s4742_s7 + $0x78] sm:$0xff]  ;;  %v4599_v16 = vld [vmem:[%s4764_s10 + $0x68] sm:$0xff]  ;;  %v4600_v2 = vld [vmem:[%s4764_s10 + $0x70] sm:$0xff]  ;;  %v6233_v30 = vmov 0.0  }
 0x181   : > { %4440 = vrsqrt.f32 %v554_v13  ;;  %v621_v35 = vadd.f32 %v5159_v19, %v601_v25  ;;  %v582_v45 = vmul.f32 %v4431_v34, %v5073_v38  ;;  %4144 = vmatprep.subr.bf16.mxu0 %v6233_v30  ;;  %4150 = vmatprep.subr.bf16.mxu1 %v6233_v30  ;;  %v4601_v32 = vld [vmem:[%s4764_s10 + $0x78] sm:$0xff]  ;;  %v5351_v13 = vld [vmem:[%s6230_s3 + $0x5] ss:$0 sm:$0xff] }
 0x182   : > { %4087 = vmatmul.mubr.msk.f32.gmra.mrb[12].mxu1 %vm377_vm0, %v872_v3  ;;  %v853_v48 = vmul.f32 %v5129_v6, %v833_v61 }
 0x183   : > { %v4433_v1 = vpop.eup %4432  ;;  %4057 = vmatprep.mubr.msk.f32.mxu0 %vm377_vm0, %v621_v35  ;;  %v602_v15 = vmul.f32 %v5150_v4, %v582_v45 }
 0x184   : > { %v4435_v10 = vpop.eup %4434  ;;  %v873_v23 = vadd.f32 %v5135_v44, %v853_v48  ;;  %v834_v49 = vmul.f32 %v4433_v1, %v5076_v39 }
 0x185   : > { %v622_v22 = vadd.f32 %v5159_v19, %v602_v15  ;;  %v583_v42 = vmul.f32 %v4435_v10, %v5087_v53 }
 0x186   : > { %4089 = vmatprep.mubr.msk.f32.mxu1 %vm377_vm0, %v873_v23  ;;  %v854_v38 = vmul.f32 %v5129_v6, %v834_v49  ;;  %v5364_v23 = vld [vmem:[%s6230_s3 + $0x4] ss:$0 sm:$0xff] }
 0x187   : > { %v4437_v20 = vpop.eup %4436  ;;  %4058 = vmatmul.mubr.msk.f32.gmra.mrb[10].mxu0 %vm377_vm0, %v622_v22  ;;  %v603_v46 = vmul.f32 %v5150_v4, %v583_v42 }
 0x188   : > { %v4439_v36 = vpop.eup %4438  ;;  %v874_v29 = vadd.f32 %v5135_v44, %v854_v38  ;;  %v584_v39 = vmul.f32 %v4437_v20, %v5090_v8 }
 0x189   : > { %v623_v5 = vadd.f32 %v5159_v19, %v603_v46  ;;  %v585_v53 = vmul.f32 %v4439_v36, %v5099_v12 }
 0x18a   : > { %4090 = vmatmul.mubr.msk.f32.gmra.mrb[14].mxu1 %vm377_vm0, %v874_v29  ;;  %v604_v6 = vmul.f32 %v5150_v4, %v584_v39 }
 0x18b   : > { %v4441_v50 = vpop.eup %4440  ;;  %4060 = vmatprep.mubr.msk.f32.mxu0 %vm377_vm0, %v623_v5  ;;  %v605_v31 = vmul.f32 %v5150_v4, %v585_v53  ;;  %4120 = vmatprep.mubr.msk.f32.mxu1 %vm377_vm0, %v4570_v51 }
 0x18c   : > { %v624_v8 = vadd.f32 %v5159_v19, %v604_v6  ;;  %v586_v12 = vmul.f32 %v4441_v50, %v5102_v57 }
 0x18d   : > { %v625_v44 = vadd.f32 %v5159_v19, %v605_v31 }
 0x18e   : > { %4061 = vmatmul.mubr.msk.f32.gmra.mrb[12].mxu0 %vm377_vm0, %v624_v8  ;;  %v606_v17 = vmul.f32 %v5150_v4, %v586_v12  ;;  %4121 = vmatmul.mubr.msk.f32.vlgmr.msra.gmra.mrb[16].mxu1 %vm377_vm0, %v4571_v55  ;;  %v4574_v4 = vld [vmem:[%s4764_s10] sm:$0xff] }
 0x18f   : > { %4063 = vmatprep.mubr.msk.f32.mxu0 %vm377_vm0, %v625_v44  ;;  %4123 = vmatprep.mubr.msk.f32.mxu1 %vm377_vm0, %v4572_v54 }
 0x190   : > { %v626_v57 = vadd.f32 %v5159_v19, %v606_v17  ;;  %v4577_v19 = vld [vmem:[%s4742_s7 + $0x28] sm:$0xff] }
 0x192   : > { %4064 = vmatmul.mubr.msk.f32.gmra.mrb[14].mxu0 %vm377_vm0, %v626_v57  ;;  %4124 = vmatmul.mubr.msk.f32.gmra.mrb[18].mxu1 %vm377_vm0, %v4573_v52 }
 0x193   : > { %4094 = vmatprep.mubr.msk.f32.mxu0 %vm377_vm0, %v4574_v4  ;;  %4126 = vmatprep.mubr.msk.f32.mxu1 %vm377_vm0, %v4575_v58 }
 0x196   : > { %4095 = vmatmul.mubr.msk.f32.vlgmr.msra.gmra.mrb[16].mxu0 %vm377_vm0, %v4576_v24  ;;  %4127 = vmatmul.mubr.msk.f32.gmra.mrb[20].mxu1 %vm377_vm0, %v4577_v19 }
 0x197   : > { %4097 = vmatprep.mubr.msk.f32.mxu0 %vm377_vm0, %v4578_v43  ;;  %4129 = vmatprep.mubr.msk.f32.mxu1 %vm377_vm0, %v4579_v26 }
 0x19a   : > { %4098 = vmatmul.mubr.msk.f32.gmra.mrb[18].mxu0 %vm377_vm0, %v4580_v62  ;;  %4130 = vmatmul.mubr.msk.f32.gmra.mrb[22].mxu1 %vm377_vm0, %v4581_v33 }
 0x19b   : > { %4100 = vmatprep.mubr.msk.f32.mxu0 %vm377_vm0, %v4582_v40  ;;  %4132 = vmatprep.mubr.msk.f32.mxu1 %vm377_vm0, %v4583_v11 }
 0x19e   : > { %4101 = vmatmul.mubr.msk.f32.gmra.mrb[20].mxu0 %vm377_vm0, %v4584_v41  ;;  %4133 = vmatmul.mubr.msk.f32.gmra.mrb[24].mxu1 %vm377_vm0, %v4585_v56 }
 0x19f   : > { %4103 = vmatprep.mubr.msk.f32.mxu0 %vm377_vm0, %v4586_v9  ;;  %4135 = vmatprep.mubr.msk.f32.mxu1 %vm377_vm0, %v4587_v47 }
 0x1a2   : > { %4104 = vmatmul.mubr.msk.f32.gmra.mrb[22].mxu0 %vm377_vm0, %v4588_v21  ;;  %4136 = vmatmul.mubr.msk.f32.gmra.mrb[26].mxu1 %vm377_vm0, %v4589_v14 }
 0x1a3   : > { %4106 = vmatprep.mubr.msk.f32.mxu0 %vm377_vm0, %v4590_v28  ;;  %4138 = vmatprep.mubr.msk.f32.mxu1 %vm377_vm0, %v4591_v59 }
 0x1a6   : > { %4107 = vmatmul.mubr.msk.f32.gmra.mrb[24].mxu0 %vm377_vm0, %v4592_v18  ;;  %4139 = vmatmul.mubr.msk.f32.gmra.mrb[28].mxu1 %vm377_vm0, %v4593_v7 }
 0x1a7   : > { %4109 = vmatprep.mubr.msk.f32.mxu0 %vm377_vm0, %v4594_v27  ;;  %4141 = vmatprep.mubr.msk.f32.mxu1 %vm377_vm0, %v4595_v37 }
 0x1aa   : > { %4110 = vmatmul.mubr.msk.f32.gmra.mrb[26].mxu0 %vm377_vm0, %v4596_v60  ;;  %4142 = vmatmul.mubr.msk.f32.gmra.mrb[30].mxu1 %vm377_vm0, %v4597_v63 }
 0x1ab   : > { %4112 = vmatprep.mubr.msk.f32.mxu0 %vm377_vm0, %v4598_v0  ;;  %4152 = vmatprep.mubr.msk.bf16.mxu1 %vm4675_vm2, %v6233_v30 }
 0x1ae   : > { %4113 = vmatmul.mubr.msk.f32.gmra.mrb[28].mxu0 %vm377_vm0, %v4599_v16 }
 0x1af   : > { %4115 = vmatprep.mubr.msk.f32.mxu0 %vm377_vm0, %v4600_v2 }
 0x1b2   : > { %4116 = vmatmul.mubr.msk.f32.gmra.mrb[30].mxu0 %vm377_vm0, %v4601_v32 }
 0x1b3   : > { %4146 = vmatprep.mubr.msk.bf16.mxu0 %vm4675_vm2, %v6233_v30 }
 0x229   : > { %v4070_v25 = vpop.f32.mrb[0].mxu1 }
 0x22a   : > { %v1206_v34 = vadd.f32 %v4070_v25, %v5351_v13  ;;  %v1200_v3 = vpop.f32.mrb[1].mxu1 }
 0x22b   : > { %v1201_v61 = vadd.f32 %v5351_v13, %v1200_v3 }
 0x22d   : > { %v5355_v35 = vpack.c.bf16 %v1206_v34, %v1201_v61  ;;  %v4073_v45 = vpop.f32.mrb[2].mxu1 }
 0x22e   : > { %v1216_v48 = vadd.f32 %v4073_v45, %v5351_v13  ;;  %v1210_v1 = vpop.f32.mrb[3].mxu1 }
 0x22f   : > { %v1211_v15 = vadd.f32 %v5351_v13, %v1210_v1  ;;  %v1719_v10 = vsel %vm377_vm0, %v5355_v35, 0 }
 0x230   : > { %4145 = vmatpush3.bf16.xpose.msra.mxu0 %v1719_v10 }
 0x231   : > { %v5366_v49 = vpack.c.bf16 %v1216_v48, %v1211_v15  ;;  %4156 = vmatprep.subr.bf16.mxu0 %v6233_v30 }
 0x232   : > { %v4044_v22 = vpop.f32.mrb[0].mxu0 }
 0x233   : > { %v1004_v42 = vadd.f32 %v4044_v22, %v5364_v23  ;;  %v998_v38 = vpop.f32.mrb[1].mxu0  ;;  %v1766_v20 = vsel %vm377_vm0, %v5366_v49, 0 }
 0x234   : > { %v999_v46 = vadd.f32 %v5364_v23, %v998_v38  ;;  %4151 = vmatpush3.bf16.xpose.msra.mxu1 %v1766_v20 }
 0x235   : > { %v4076_v36 = vpop.f32.mrb[4].mxu1  ;;  %4162 = vmatprep.subr.bf16.mxu1 %v6233_v30 }
 0x236   : > { %v5374_v29 = vpack.c.bf16 %v1004_v42, %v999_v46  ;;  %v1226_v39 = vadd.f32 %v4076_v36, %v5351_v13  ;;  %v1220_v5 = vpop.f32.mrb[5].mxu1 }
 0x237   : > { %v1221_v53 = vadd.f32 %v5351_v13, %v1220_v5 }
 0x238   : > { %4147 = vmatmul.mubr.msk.bf16.vlgmr.msra.gmra.mrb[32].mxu0 %vm377_vm0, %v5374_v29 }
 0x239   : > { %v5380_v6 = vpack.c.bf16 %v1226_v39, %v1221_v53  ;;  %4158 = vmatprep.mubr.msk.bf16.mxu0 %vm4675_vm2, %v6233_v30  ;;  %v5456_v39 = vld [vmem:[%s6230_s3 + $0x7] ss:$0 sm:$0xff] }
 0x23a   : > { %v4047_v50 = vpop.f32.mrb[2].mxu0 }
 0x23b   : > { %v1014_v31 = vadd.f32 %v4047_v50, %v5364_v23  ;;  %v1008_v51 = vpop.f32.mrb[3].mxu0  ;;  %v1813_v8 = vsel %vm377_vm0, %v5380_v6, 0 }
 0x23c   : > { %v1009_v12 = vadd.f32 %v5364_v23, %v1008_v51  ;;  %4157 = vmatpush3.bf16.xpose.msra.mxu0 %v1813_v8 }
 0x23d   : > { %v4079_v44 = vpop.f32.mrb[6].mxu1  ;;  %4168 = vmatprep.subr.bf16.mxu0 %v6233_v30 }
 0x23e   : > { %v5389_v17 = vpack.c.bf16 %v1014_v31, %v1009_v12  ;;  %v1236_v55 = vadd.f32 %v4079_v44, %v5351_v13  ;;  %v1230_v54 = vpop.f32.mrb[7].mxu1 }
 0x23f   : > { %v1231_v57 = vadd.f32 %v5351_v13, %v1230_v54 }
 0x240   : > { %4153 = vmatmul.mubr.msk.bf16.vlgmr.msra.gmra.mrb[32].mxu1 %vm377_vm0, %v5389_v17 }
 0x241   : > { %v5395_v52 = vpack.c.bf16 %v1236_v55, %v1231_v57  ;;  %4164 = vmatprep.mubr.msk.bf16.mxu1 %vm4675_vm2, %v6233_v30 }
 0x242   : > { %v4050_v4 = vpop.f32.mrb[4].mxu0 }
 0x243   : > { %v1024_v58 = vadd.f32 %v4050_v4, %v5364_v23  ;;  %v1018_v24 = vpop.f32.mrb[5].mxu0  ;;  %v1860_v19 = vsel %vm377_vm0, %v5395_v52, 0 }
 0x244   : > { %v1019_v43 = vadd.f32 %v5364_v23, %v1018_v24  ;;  %4163 = vmatpush3.bf16.xpose.msra.mxu1 %v1860_v19 }
 0x245   : > { %v4082_v26 = vpop.f32.mrb[8].mxu1  ;;  %4174 = vmatprep.subr.bf16.mxu1 %v6233_v30 }
 0x246   : > { %v5404_v62 = vpack.c.bf16 %v1024_v58, %v1019_v43  ;;  %v1246_v33 = vadd.f32 %v4082_v26, %v5351_v13  ;;  %v1240_v40 = vpop.f32.mrb[9].mxu1 }
 0x247   : > { %v1241_v11 = vadd.f32 %v5351_v13, %v1240_v40  ;;  %v3835_v40 = vld [vmem:[%s6230_s3 + $0x6] ss:$0 sm:$0xff] }
 0x248   : > { %4159 = vmatmul.mubr.msk.bf16.vlgmr.msra.gmra.mrb[36].mxu0 %vm377_vm0, %v5404_v62 }
 0x249   : > { %v5410_v41 = vpack.c.bf16 %v1246_v33, %v1241_v11  ;;  %4170 = vmatprep.mubr.msk.bf16.mxu0 %vm4675_vm2, %v6233_v30 }
 0x24a   : > { %v4053_v56 = vpop.f32.mrb[6].mxu0 }
 0x24b   : > { %v1034_v9 = vadd.f32 %v4053_v56, %v5364_v23  ;;  %v1028_v47 = vpop.f32.mrb[7].mxu0  ;;  %v1907_v21 = vsel %vm377_vm0, %v5410_v41, 0 }
 0x24c   : > { %v1029_v14 = vadd.f32 %v5364_v23, %v1028_v47  ;;  %4169 = vmatpush3.bf16.xpose.msra.mxu0 %v1907_v21 }
 0x24d   : > { %v4085_v28 = vpop.f32.mrb[10].mxu1  ;;  %4180 = vmatprep.subr.bf16.mxu0 %v6233_v30 }
 0x24e   : > { %v5419_v59 = vpack.c.bf16 %v1034_v9, %v1029_v14  ;;  %v1256_v18 = vadd.f32 %v4085_v28, %v5351_v13  ;;  %v1250_v7 = vpop.f32.mrb[11].mxu1 }
 0x24f   : > { %v1251_v27 = vadd.f32 %v5351_v13, %v1250_v7 }
 0x250   : > { %4165 = vmatmul.mubr.msk.bf16.vlgmr.msra.gmra.mrb[36].mxu1 %vm377_vm0, %v5419_v59 }
 0x251   : > { %v5425_v37 = vpack.c.bf16 %v1256_v18, %v1251_v27  ;;  %4176 = vmatprep.mubr.msk.bf16.mxu1 %vm4675_vm2, %v6233_v30 }
 0x252   : > { %v4056_v60 = vpop.f32.mrb[8].mxu0 }
 0x253   : > { %v1044_v63 = vadd.f32 %v4056_v60, %v5364_v23  ;;  %v1038_v0 = vpop.f32.mrb[9].mxu0  ;;  %v1954_v16 = vsel %vm377_vm0, %v5425_v37, 0 }
 0x254   : > { %v1039_v2 = vadd.f32 %v5364_v23, %v1038_v0  ;;  %4175 = vmatpush3.bf16.xpose.msra.mxu1 %v1954_v16 }
 0x255   : > { %v4088_v32 = vpop.f32.mrb[12].mxu1  ;;  %4186 = vmatprep.subr.bf16.mxu1 %v6233_v30 }
 0x256   : > { %v5434_v25 = vpack.c.bf16 %v1044_v63, %v1039_v2  ;;  %v1266_v34 = vadd.f32 %v4088_v32, %v5351_v13  ;;  %v1260_v3 = vpop.f32.mrb[13].mxu1 }
 0x257   : > { %v1261_v61 = vadd.f32 %v5351_v13, %v1260_v3 }
 0x258   : > { %4171 = vmatmul.mubr.msk.bf16.vlgmr.msra.gmra.mrb[40].mxu0 %vm377_vm0, %v5434_v25 }
 0x259   : > { %v5440_v45 = vpack.c.bf16 %v1266_v34, %v1261_v61  ;;  %4182 = vmatprep.mubr.msk.bf16.mxu0 %vm4675_vm2, %v6233_v30 }
 0x25a   : > { %v4059_v48 = vpop.f32.mrb[10].mxu0 }
 0x25b   : > { %v1054_v1 = vadd.f32 %v4059_v48, %v5364_v23  ;;  %v1048_v15 = vpop.f32.mrb[11].mxu0  ;;  %v2001_v10 = vsel %vm377_vm0, %v5440_v45, 0 }
 0x25c   : > { %v1049_v22 = vadd.f32 %v5364_v23, %v1048_v15  ;;  %4181 = vmatpush3.bf16.xpose.msra.mxu0 %v2001_v10 }
 0x25d   : > { %v4091_v42 = vpop.f32.mrb[14].mxu1  ;;  %4192 = vmatprep.subr.bf16.mxu0 %v6233_v30 }
 0x25e   : > { %v5449_v38 = vpack.c.bf16 %v1054_v1, %v1049_v22  ;;  %v1276_v20 = vadd.f32 %v4091_v42, %v5351_v13  ;;  %v1270_v46 = vpop.f32.mrb[15].mxu1 }
 0x25f   : > { %v1271_v36 = vadd.f32 %v5351_v13, %v1270_v46 }
 0x260   : > { %4177 = vmatmul.mubr.msk.bf16.vlgmr.msra.gmra.mrb[40].mxu1 %vm377_vm0, %v5449_v38 }
 0x261   : > { %v5460_v5 = vpack.c.bf16 %v1276_v20, %v1271_v36  ;;  %v4062_v53 = vpop.f32.mrb[12].mxu0  ;;  %4188 = vmatprep.mubr.msk.bf16.mxu1 %vm4675_vm2, %v6233_v30  ;;  %v4122_v50 = vpop.f32.mrb[16].mxu1 }
 0x262   : > { %v1064_v31 = vadd.f32 %v4062_v53, %v5364_v23  ;;  %v1058_v51 = vpop.f32.mrb[13].mxu0  ;;  %v1610_v13 = vadd.f32 %v4122_v50, %v5456_v39  ;;  %v1604_v8 = vpop.f32.mrb[17].mxu1 }
 0x263   : > { %v1059_v12 = vadd.f32 %v5364_v23, %v1058_v51  ;;  %v2048_v44 = vsel %vm377_vm0, %v5460_v5, 0  ;;  %v1605_v55 = vadd.f32 %v5456_v39, %v1604_v8 }
 0x264   : > { %4187 = vmatpush3.bf16.xpose.msra.mxu1 %v2048_v44 }
 0x265   : > { %v5470_v54 = vpack.c.bf16 %v1064_v31, %v1059_v12  ;;  %v4065_v57 = vpop.f32.mrb[14].mxu0  ;;  %v1707_v4 = vpack.c.bf16 %v1610_v13, %v1605_v55  ;;  %v4125_v58 = vpop.f32.mrb[18].mxu1  ;;  %4198 = vmatprep.subr.bf16.mxu1 %v6233_v30 }
 0x266   : > { %v1074_v24 = vadd.f32 %v4065_v57, %v5364_v23  ;;  %v1068_v19 = vpop.f32.mrb[15].mxu0  ;;  %v1620_v43 = vadd.f32 %v4125_v58, %v5456_v39  ;;  %v1614_v26 = vpop.f32.mrb[19].mxu1 }
 0x267   : > { %v1069_v33 = vadd.f32 %v5364_v23, %v1068_v19  ;;  %4183 = vmatmul.mubr.msk.bf16.vlgmr.msra.gmra.mrb[44].mxu0 %vm377_vm0, %v5470_v54  ;;  %v1615_v11 = vadd.f32 %v5456_v39, %v1614_v26 }
 0x268   : > { %4193 = vmatpush3.bf16.msra.mxu0 %v1707_v4  ;;  %4194 = vmatprep.mubr.msk.bf16.mxu0 %vm4675_vm2, %v6233_v30 }
 0x269   : > { %v5484_v56 = vpack.c.bf16 %v1074_v24, %v1069_v33  ;;  %v4096_v9 = vpop.f32.mrb[16].mxu0  ;;  %v1708_v47 = vpack.c.bf16 %v1620_v43, %v1615_v11  ;;  %v4128_v21 = vpop.f32.mrb[20].mxu1  ;;  %4204 = vmatprep.subr.bf16.mxu0 %v6233_v30 }
 0x26a   : > { %v5487_v23 = vadd.f32 %v4096_v9, %v3835_v40  ;;  %v1402_v14 = vpop.f32.mrb[17].mxu0  ;;  %v5490_v28 = vadd.f32 %v4128_v21, %v5456_v39  ;;  %v1624_v18 = vpop.f32.mrb[21].mxu1 }
 0x26b   : > { %4189 = vmatmul.mubr.msk.bf16.vlgmr.msra.gmra.mrb[44].mxu1 %vm377_vm0, %v5484_v56  ;;  %v5494_v7 = vadd.f32 %v3835_v40, %v1402_v14  ;;  %v5497_v27 = vadd.f32 %v5456_v39, %v1624_v18 }
 0x26c   : > { %4199 = vmatpush3.bf16.msra.mxu1 %v1708_v47  ;;  %4200 = vmatprep.mubr.msk.bf16.mxu1 %vm4675_vm2, %v6233_v30 }
 0x26d   : > { %v4099_v63 = vpop.f32.mrb[18].mxu0  ;;  %v4131_v16 = vpop.f32.mrb[22].mxu1  ;;  %4210 = vmatprep.subr.bf16.mxu1 %v6233_v30 }
 0x26e   : > { %v5506_v2 = vadd.f32 %v4099_v63, %v3835_v40  ;;  %v1412_v32 = vpop.f32.mrb[19].mxu0  ;;  %v5509_v34 = vadd.f32 %v4131_v16, %v5456_v39  ;;  %v1634_v3 = vpop.f32.mrb[23].mxu1 }
 0x26f   : > { %v5511_v61 = vadd.f32 %v3835_v40, %v1412_v32  ;;  %v5514_v48 = vadd.f32 %v5456_v39, %v1634_v3 }
 0x271   : > { %v4102_v15 = vpop.f32.mrb[20].mxu0  ;;  %v4134_v22 = vpop.f32.mrb[24].mxu1 }
 0x272   : > { %v5520_v42 = vadd.f32 %v4102_v15, %v3835_v40  ;;  %v1422_v20 = vpop.f32.mrb[21].mxu0  ;;  %v5523_v46 = vadd.f32 %v4134_v22, %v5456_v39  ;;  %v1644_v3 = vpop.f32.mrb[25].mxu1 }
 0x273   : > { %v5525_v36 = vadd.f32 %v3835_v40, %v1422_v20  ;;  %v5560_v15 = vadd.f32 %v5456_v39, %v1644_v3 }
 0x275   : > { %v4105_v50 = vpop.f32.mrb[22].mxu0  ;;  %v4137_v22 = vpop.f32.mrb[26].mxu1 }
 0x276   : > { %v5529_v31 = vadd.f32 %v4105_v50, %v3835_v40  ;;  %v1432_v51 = vpop.f32.mrb[23].mxu0  ;;  %v5563_v20 = vadd.f32 %v4137_v22, %v5456_v39  ;;  %v1654_v50 = vpop.f32.mrb[27].mxu1 }
 0x277   : > { %v5531_v13 = vadd.f32 %v3835_v40, %v1432_v51 }
 0x279   : > { %6244 = vst [vmem:[#allocation2_spill] sm:$0xff] %v5531_v13  ;;  %v4108_v12 = vpop.f32.mrb[24].mxu0 }
 0x27a   : > { %v5535_v44 = vadd.f32 %v4108_v12, %v3835_v40  ;;  %v1442_v55 = vpop.f32.mrb[25].mxu0  ;;  %v5568_v12 = vadd.f32 %v5456_v39, %v1654_v50 }
 0x27b   : > { %v5537_v57 = vadd.f32 %v3835_v40, %v1442_v55 }
 0x27c   : > { %6245 = vst [vmem:[#allocation3_spill] sm:$0xff] %v5535_v44 }
 0x27d   : > { %6246 = vst [vmem:[#allocation4_spill] sm:$0xff] %v5537_v57  ;;  %v4111_v58 = vpop.f32.mrb[26].mxu0 }
 0x27e   : > { %v5541_v24 = vadd.f32 %v4111_v58, %v3835_v40  ;;  %v1452_v19 = vpop.f32.mrb[27].mxu0 }
 0x27f   : > { %v5543_v43 = vadd.f32 %v3835_v40, %v1452_v19 }
 0x280   : > { %6247 = vst [vmem:[#allocation5_spill] sm:$0xff] %v5541_v24 }
 0x281   : > { %6248 = vst [vmem:[#allocation6_spill] sm:$0xff] %v5543_v43  ;;  %v4114_v33 = vpop.f32.mrb[28].mxu0 }
 0x282   : > { %v5547_v11 = vadd.f32 %v4114_v33, %v3835_v40  ;;  %v1462_v9 = vpop.f32.mrb[29].mxu0 }
 0x283   : > { %v5549_v47 = vadd.f32 %v3835_v40, %v1462_v9 }
 0x284   : > { %6249 = vst [vmem:[#allocation7_spill] sm:$0xff] %v5547_v11 }
 0x285   : > { %6250 = vst [vmem:[#allocation8_spill] sm:$0xff] %v5549_v47  ;;  %v4117_v14 = vpop.f32.mrb[30].mxu0 }
 0x286   : > { %v5553_v18 = vadd.f32 %v4117_v14, %v3835_v40  ;;  %v1472_v63 = vpop.f32.mrb[31].mxu0 }
 0x287   : > { %v5555_v16 = vadd.f32 %v3835_v40, %v1472_v63  ;;  %v4140_v40 = vpop.f32.mrb[28].mxu1 }
 0x288   : > { %6251 = vst [vmem:[#allocation9_spill] sm:$0xff] %v5553_v18  ;;  %v5571_v55 = vadd.f32 %v4140_v40, %v5456_v39  ;;  %v1664_v58 = vpop.f32.mrb[29].mxu1 }
 0x289   : > { %6252 = vst [vmem:[#allocation10_spill] sm:$0xff] %v5555_v16  ;;  %v5576_v33 = vadd.f32 %v5456_v39, %v1664_v58  ;;  %v4143_v9 = vpop.f32.mrb[30].mxu1 }
 0x28a   : > { %v5579_v14 = vadd.f32 %v4143_v9, %v5456_v39  ;;  %v1674_v63 = vpop.f32.mrb[31].mxu1 }
 0x28b   : > { %v5584_v22 = vadd.f32 %v5456_v39, %v1674_v63 }
 0x30b   : > { %v5588_v40 = vpop.f32.mrb[32].mxu0 }
 0x30c   : > { %v4148_v32 = vpop.f32.mrb[33].mxu0  ;;  %v2092_v58 = vsel %vm2091_vm3, %v5588_v40, -inf }
 0x30d   : > { %2093 = vmax.xlane.f32.xlu0 %v2092_v58  ;;  %v5592_v9 = vpop.f32.mrb[34].mxu0 }
 0x30e   : > { %v4149_v21 = vpop.f32.mrb[35].mxu0  ;;  %v2095_v26 = vsel %vm2091_vm3, %v5592_v9, -inf }
 0x30f   : > { %2096 = vmax.xlane.f32.xlu1 %v2095_v26 }
 0x313   : > { %v5596_v39 = vpop.f32.mrb[32].mxu1 }
 0x314   : > { %v4154_v63 = vpop.f32.mrb[33].mxu1  ;;  %v2098_v4 = vsel %vm2091_vm3, %v5596_v39, -inf }
 0x315   : > { %v5600_v8 = vpop.f32.mrb[34].mxu1  ;;  %2099 = vmax.xlane.f32.xlu0 %v2098_v4 }
 0x316   : > { %v4155_v32 = vpop.f32.mrb[35].mxu1  ;;  %v2101_v58 = vsel %vm2091_vm3, %v5600_v8, -inf }
 0x317   : > { %2102 = vmax.xlane.f32.xlu1 %v2101_v58 }
 0x31b   : > { %v5604_v53 = vpop.f32.mrb[36].mxu0 }
 0x31c   : > { %v4160_v21 = vpop.f32.mrb[37].mxu0  ;;  %v2104_v26 = vsel %vm2091_vm3, %v5604_v53, -inf }
 0x31d   : > { %2105 = vmax.xlane.f32.xlu0 %v2104_v26  ;;  %v5608_v1 = vpop.f32.mrb[38].mxu0 }
 0x31e   : > { %v4161_v63 = vpop.f32.mrb[39].mxu0  ;;  %v2107_v60 = vsel %vm2091_vm3, %v5608_v1, -inf }
 0x31f   : > { %2108 = vmax.xlane.f32.xlu1 %v2107_v60 }
 0x323   : > { %v5612_v4 = vpop.f32.mrb[36].mxu1 }
 0x324   : > { %v4166_v32 = vpop.f32.mrb[37].mxu1  ;;  %v2110_v58 = vsel %vm2091_vm3, %v5612_v4, -inf }
 0x325   : > { %v5616_v50 = vpop.f32.mrb[38].mxu1  ;;  %2111 = vmax.xlane.f32.xlu0 %v2110_v58 }
 0x326   : > { %v4167_v21 = vpop.f32.mrb[39].mxu1  ;;  %v2113_v26 = vsel %vm2091_vm3, %v5616_v50, -inf }
 0x327   : > { %2114 = vmax.xlane.f32.xlu1 %v2113_v26 }
 0x32b   : > { %v5620_v3 = vpop.f32.mrb[40].mxu0 }
 0x32c   : > { %v4172_v63 = vpop.f32.mrb[41].mxu0  ;;  %v2116_v60 = vsel %vm2091_vm3, %v5620_v3, -inf }
 0x32d   : > { %2117 = vmax.xlane.f32.xlu0 %v2116_v60  ;;  %v5624_v19 = vpop.f32.mrb[42].mxu0 }
 0x32e   : > { %v4173_v32 = vpop.f32.mrb[43].mxu0  ;;  %v2119_v51 = vsel %vm2091_vm3, %v5624_v19, -inf }
 0x32f   : > { %2120 = vmax.xlane.f32.xlu1 %v2119_v51 }
 0x333   : > { %v5628_v58 = vpop.f32.mrb[40].mxu1 }
 0x334   : > { %v4178_v21 = vpop.f32.mrb[41].mxu1  ;;  %v2122_v26 = vsel %vm2091_vm3, %v5628_v58, -inf }
 0x335   : > { %v5632_v10 = vpop.f32.mrb[42].mxu1  ;;  %2123 = vmax.xlane.f32.xlu0 %v2122_v26 }
 0x336   : > { %v4179_v63 = vpop.f32.mrb[43].mxu1  ;;  %v2125_v60 = vsel %vm2091_vm3, %v5632_v10, -inf }
 0x337   : > { %2126 = vmax.xlane.f32.xlu1 %v2125_v60 }
 0x33a   : > { %v5636_v30 = vpop.f32.mrb[44].mxu0 }
 0x33b   : > { %v4184_v32 = vpop.f32.mrb[45].mxu0  ;;  %v2128_v51 = vsel %vm2091_vm3, %v5636_v30, -inf }
 0x33c   : > { %2129 = vmax.xlane.f32.xlu0 %v2128_v51  ;;  %v5640_v0 = vpop.f32.mrb[46].mxu0 }
 0x33d   : > { %v4185_v21 = vpop.f32.mrb[47].mxu0  ;;  %v2131_v16 = vsel %vm2091_vm3, %v5640_v0, -inf }
 0x33e   : > { %2132 = vmax.xlane.f32.xlu1 %v2131_v16  ;;  %v5644_v26 = vpop.f32.mrb[44].mxu1 }
 0x33f   : > { %v4190_v63 = vpop.f32.mrb[45].mxu1  ;;  %v2134_v60 = vsel %vm2091_vm3, %v5644_v26, -inf }
 0x340   : > { %2135 = vmax.xlane.f32.xlu0 %v2134_v60  ;;  %v5648_v18 = vpop.f32.mrb[46].mxu1 }
 0x341   : > { %v4191_v32 = vpop.f32.mrb[47].mxu1  ;;  %v2137_v51 = vsel %vm2091_vm3, %v5648_v18, -inf }
 0x342   : > { %2138 = vmax.xlane.f32.xlu1 %v2137_v51 }
 0x39a   : > { %v2094_v47 = vpop.xlane.xlu0 %2093 }
 0x39b   : > { %v2140_v21 = vsub.f32 %v5588_v40, %v2094_v47 }
 0x39c   : > { %v2097_v11 = vpop.xlane.xlu1 %2096 }
 0x39d   : > { %v2156_v43 = vmul.f32 1.442695, %v2140_v21  ;;  %v2141_v16 = vsub.f32 %v5592_v9, %v2097_v11 }
 0x39f   : > { %4442 = vpow2.f32 %v2156_v43  ;;  %v2158_v63 = vmul.f32 1.442695, %v2141_v16 }
 0x3a1   : > { %4444 = vpow2.f32 %v2158_v63 }
 0x3a2   : > { %v2100_v24 = vpop.xlane.xlu0 %2099 }
 0x3a3   : > { %v2142_v60 = vsub.f32 %v5596_v39, %v2100_v24 }
 0x3a4   : > { %v2103_v57 = vpop.xlane.xlu1 %2102 }
 0x3a5   : > { %v2160_v44 = vmul.f32 1.442695, %v2142_v60  ;;  %v2143_v32 = vsub.f32 %v5600_v8, %v2103_v57 }
 0x3a7   : > { %4446 = vpow2.f32 %v2160_v44  ;;  %v2162_v13 = vmul.f32 1.442695, %v2143_v32 }
 0x3a9   : > { %v5656_v51 = vpop.eup %4442  ;;  %4448 = vpow2.f32 %v2162_v13 }
 0x3aa   : > { %v2106_v47 = vpop.xlane.xlu0 %2105  ;;  %v2188_v40 = vsel %vm2091_vm3, %v5656_v51, 0.0 }
 0x3ab   : > { %v5660_v11 = vpop.eup %4444  ;;  %v2144_v43 = vsub.f32 %v5604_v53, %v2106_v47  ;;  %2189 = vadd.xlane.f32.xlu0 %v2188_v40 }
 0x3ac   : > { %v2109_v9 = vpop.xlane.xlu1 %2108  ;;  %v2191_v24 = vsel %vm2091_vm3, %v5660_v11, 0.0 }
 0x3ad   : > { %v2164_v39 = vmul.f32 1.442695, %v2144_v43  ;;  %v2145_v8 = vsub.f32 %v5608_v1, %v2109_v9  ;;  %2192 = vadd.xlane.f32.xlu1 %v2191_v24 }
 0x3af   : > { %4450 = vpow2.f32 %v2164_v39  ;;  %v2166_v44 = vmul.f32 1.442695, %v2145_v8 }
 0x3b1   : > { %v5666_v13 = vpop.eup %4446  ;;  %4452 = vpow2.f32 %v2166_v44 }
 0x3b2   : > { %v2112_v57 = vpop.xlane.xlu0 %2111  ;;  %v2194_v21 = vsel %vm2091_vm3, %v5666_v13, 0.0 }
 0x3b3   : > { %v5670_v16 = vpop.eup %4448  ;;  %v2146_v53 = vsub.f32 %v5612_v4, %v2112_v57  ;;  %2195 = vadd.xlane.f32.xlu0 %v2194_v21 }
 0x3b4   : > { %v2115_v63 = vpop.xlane.xlu1 %2114  ;;  %v2197_v60 = vsel %vm2091_vm3, %v5670_v16, 0.0 }
 0x3b5   : > { %v2168_v1 = vmul.f32 1.442695, %v2146_v53  ;;  %v2147_v32 = vsub.f32 %v5616_v50, %v2115_v63  ;;  %2198 = vadd.xlane.f32.xlu1 %v2197_v60 }
 0x3b7   : > { %4454 = vpow2.f32 %v2168_v1  ;;  %v2170_v47 = vmul.f32 1.442695, %v2147_v32 }
 0x3b9   : > { %v5676_v40 = vpop.eup %4450  ;;  %4456 = vpow2.f32 %v2170_v47 }
 0x3ba   : > { %v2118_v43 = vpop.xlane.xlu0 %2117  ;;  %v2200_v9 = vsel %vm2091_vm3, %v5676_v40, 0.0 }
 0x3bb   : > { %v5680_v24 = vpop.eup %4452  ;;  %v2148_v4 = vsub.f32 %v5620_v3, %v2118_v43  ;;  %2201 = vadd.xlane.f32.xlu0 %v2200_v9 }
 0x3bc   : > { %v2121_v39 = vpop.xlane.xlu1 %2120  ;;  %v2203_v8 = vsel %vm2091_vm3, %v5680_v24, 0.0 }
 0x3bd   : > { %v2172_v50 = vmul.f32 1.442695, %v2148_v4  ;;  %v2149_v44 = vsub.f32 %v5624_v19, %v2121_v39  ;;  %2204 = vadd.xlane.f32.xlu1 %v2203_v8 }
 0x3bf   : > { %4458 = vpow2.f32 %v2172_v50  ;;  %v2174_v57 = vmul.f32 1.442695, %v2149_v44 }
 0x3c1   : > { %v5686_v21 = vpop.eup %4454  ;;  %4460 = vpow2.f32 %v2174_v57 }
 0x3c2   : > { %v2124_v53 = vpop.xlane.xlu0 %2123  ;;  %v2206_v63 = vsel %vm2091_vm3, %v5686_v21, 0.0 }
 0x3c3   : > { %v5690_v60 = vpop.eup %4456  ;;  %v2150_v3 = vsub.f32 %v5628_v58, %v2124_v53  ;;  %2207 = vadd.xlane.f32.xlu0 %v2206_v63 }
 0x3c4   : > { %v2127_v1 = vpop.xlane.xlu1 %2126  ;;  %v2209_v32 = vsel %vm2091_vm3, %v5690_v60, 0.0 }
 0x3c5   : > { %v2176_v19 = vmul.f32 1.442695, %v2150_v3  ;;  %v2151_v47 = vsub.f32 %v5632_v10, %v2127_v1  ;;  %2210 = vadd.xlane.f32.xlu1 %v2209_v32 }
 0x3c7   : > { %4462 = vpow2.f32 %v2176_v19  ;;  %v2178_v43 = vmul.f32 1.442695, %v2151_v47 }
 0x3c9   : > { %v5696_v9 = vpop.eup %4458  ;;  %4464 = vpow2.f32 %v2178_v43  ;;  %v2130_v4 = vpop.xlane.xlu0 %2129 }
 0x3ca   : > { %v2152_v39 = vsub.f32 %v5636_v30, %v2130_v4  ;;  %v2212_v58 = vsel %vm2091_vm3, %v5696_v9, 0.0 }
 0x3cb   : > { %v5701_v8 = vpop.eup %4460  ;;  %2213 = vadd.xlane.f32.xlu0 %v2212_v58  ;;  %v2133_v50 = vpop.xlane.xlu1 %2132 }
 0x3cc   : > { %v2180_v44 = vmul.f32 1.442695, %v2152_v39  ;;  %v2153_v57 = vsub.f32 %v5640_v0, %v2133_v50  ;;  %v2215_v10 = vsel %vm2091_vm3, %v5701_v8, 0.0 }
 0x3cd   : > { %2216 = vadd.xlane.f32.xlu1 %v2215_v10  ;;  %v2136_v53 = vpop.xlane.xlu0 %2135 }
 0x3ce   : > { %4466 = vpow2.f32 %v2180_v44  ;;  %v2182_v63 = vmul.f32 1.442695, %v2153_v57  ;;  %v2154_v3 = vsub.f32 %v5644_v26, %v2136_v53 }
 0x3cf   : > { %v2139_v30 = vpop.xlane.xlu1 %2138 }
 0x3d0   : > { %4468 = vpow2.f32 %v2182_v63  ;;  %v2184_v1 = vmul.f32 1.442695, %v2154_v3  ;;  %v2155_v32 = vsub.f32 %v5648_v18, %v2139_v30 }
 0x3d1   : > { %v5708_v19 = vpop.eup %4462 }
 0x3d2   : > { %4470 = vpow2.f32 %v2184_v1  ;;  %v2186_v47 = vmul.f32 1.442695, %v2155_v32  ;;  %v2218_v0 = vsel %vm2091_vm3, %v5708_v19, 0.0 }
 0x3d3   : > { %v5712_v43 = vpop.eup %4464  ;;  %2219 = vadd.xlane.f32.xlu0 %v2218_v0 }
 0x3d4   : > { %4472 = vpow2.f32 %v2186_v47  ;;  %v2221_v4 = vsel %vm2091_vm3, %v5712_v43, 0.0 }
 0x3d5   : > { %2222 = vadd.xlane.f32.xlu1 %v2221_v4 }
 0x3d8   : > { %v5716_v26 = vpop.eup %4466 }
 0x3d9   : > { %v2224_v18 = vsel %vm2091_vm3, %v5716_v26, 0.0 }
 0x3da   : > { %v5720_v39 = vpop.eup %4468  ;;  %2225 = vadd.xlane.f32.xlu0 %v2224_v18 }
 0x3db   : > { %v2227_v58 = vsel %vm2091_vm3, %v5720_v39, 0.0 }
 0x3dc   : > { %v5724_v50 = vpop.eup %4470  ;;  %2228 = vadd.xlane.f32.xlu1 %v2227_v58 }
 0x3dd   : > { %v2230_v44 = vsel %vm2091_vm3, %v5724_v50, 0.0 }
 0x3de   : > { %v5728_v57 = vpop.eup %4472  ;;  %2231 = vadd.xlane.f32.xlu0 %v2230_v44 }
 0x3df   : > { %v2233_v10 = vsel %vm2091_vm3, %v5728_v57, 0.0 }
 0x3e0   : > { %2234 = vadd.xlane.f32.xlu1 %v2233_v10  ;;  %v6253_v10 = vpack.c.bf16 %v5490_v28, %v5497_v27  ;;  %v6255_v28 = vpack.c.bf16 %v5509_v34, %v5514_v48  ;;  %v6256_v34 = vpack.c.bf16 %v5523_v46, %v5560_v15  ;;  %v6257_v46 = vpack.c.bf16 %v5563_v20, %v5568_v12 }
 0x3e1   : > { %v6258_v12 = vpack.c.bf16 %v5571_v55, %v5576_v33  ;;  %v6259_v55 = vpack.c.bf16 %v5579_v14, %v5584_v22  ;;  %v1716_v14 = vsel %vm377_vm0, %v5374_v29, 0  ;;  %v1810_v29 = vsel %vm377_vm0, %v5404_v62, 0 }
 0x3e2   : > { %v6260_v62 = vpack.c.bf16 %v5487_v23, %v5494_v7  ;;  %v4603_v7 = vld [vmem:[%s4764_s10 + $0x8] sm:$0xff] }
 0x438   : > { %v2190_v53 = vpop.xlane.xlu0 %2189 }
 0x439   : > { %4474 = vrcp.f32 %v2190_v53  ;;  %v6254_v53 = vmov 0.0  }
 0x43a   : > { %v2193_v63 = vpop.xlane.xlu1 %2192 }
 0x43b   : > { %4476 = vrcp.f32 %v2193_v63 }
 0x440   : > { %v2196_v3 = vpop.xlane.xlu0 %2195 }
 0x441   : > { %4478 = vrcp.f32 %v2196_v3 }
 0x442   : > { %v2199_v30 = vpop.xlane.xlu1 %2198 }
 0x443   : > { %v4475_v1 = vpop.eup %4474  ;;  %4480 = vrcp.f32 %v2199_v30 }
 0x444   : > { %v2252_v47 = vmul.f32 %v4475_v1, %v5656_v51 }
 0x445   : > { %v4477_v32 = vpop.eup %4476 }
 0x446   : > { %v2253_v0 = vmul.f32 %v4477_v32, %v5660_v11 }
 0x448   : > { %v2202_v4 = vpop.xlane.xlu0 %2201  ;;  %v2268_v18 = vpack.c.bf16 %v2253_v0, %v2252_v47 }
 0x449   : > { %4482 = vrcp.f32 %v2202_v4 }
 0x44a   : > { %4195 = vmatmul.mubr.msk.bf16.vlgmr.msra.gmra.mrb[48].mxu0 %vm2091_vm3, %v2268_v18  ;;  %v2205_v58 = vpop.xlane.xlu1 %2204 }
 0x44b   : > { %v4479_v44 = vpop.eup %4478  ;;  %4205 = vmatpush3.bf16.msra.mxu0 %v6253_v10  ;;  %4484 = vrcp.f32 %v2205_v58  ;;  %4206 = vmatprep.mubr.msk.bf16.mxu0 %vm4675_vm2, %v6254_v53 }
 0x44c   : > { %4216 = vmatprep.subr.bf16.mxu0 %v6254_v53  ;;  %v2254_v11 = vmul.f32 %v4479_v44, %v5666_v13 }
 0x44d   : > { %v4481_v51 = vpop.eup %4480 }
 0x44e   : > { %v2255_v63 = vmul.f32 %v4481_v51, %v5670_v16 }
 0x450   : > { %v2208_v3 = vpop.xlane.xlu0 %2207  ;;  %v2269_v30 = vpack.c.bf16 %v2255_v63, %v2254_v11 }
 0x451   : > { %4486 = vrcp.f32 %v2208_v3 }
 0x452   : > { %4201 = vmatmul.mubr.msk.bf16.vlgmr.msra.gmra.mrb[48].mxu1 %vm2091_vm3, %v2269_v30  ;;  %v2211_v1 = vpop.xlane.xlu1 %2210 }
 0x453   : > { %v4483_v32 = vpop.eup %4482  ;;  %4211 = vmatpush3.bf16.msra.mxu1 %v6255_v28  ;;  %4488 = vrcp.f32 %v2211_v1  ;;  %4212 = vmatprep.mubr.msk.bf16.mxu1 %vm4675_vm2, %v6254_v53 }
 0x454   : > { %4222 = vmatprep.subr.bf16.mxu1 %v6254_v53  ;;  %v2256_v13 = vmul.f32 %v4483_v32, %v5676_v40 }
 0x455   : > { %v4485_v27 = vpop.eup %4484 }
 0x456   : > { %v2257_v16 = vmul.f32 %v4485_v27, %v5680_v24 }
 0x458   : > { %v2214_v47 = vpop.xlane.xlu0 %2213  ;;  %v2270_v0 = vpack.c.bf16 %v2257_v16, %v2256_v13 }
 0x459   : > { %4490 = vrcp.f32 %v2214_v47 }
 0x45a   : > { %4207 = vmatmul.mubr.msk.bf16.vlgmr.msra.gmra.mrb[52].mxu0 %vm2091_vm3, %v2270_v0  ;;  %v2217_v4 = vpop.xlane.xlu1 %2216 }
 0x45b   : > { %v4487_v18 = vpop.eup %4486  ;;  %4217 = vmatpush3.bf16.msra.mxu0 %v6256_v34  ;;  %4492 = vrcp.f32 %v2217_v4  ;;  %4218 = vmatprep.mubr.msk.bf16.mxu0 %vm4675_vm2, %v6254_v53 }
 0x45c   : > { %4228 = vmatprep.subr.bf16.mxu0 %v6254_v53  ;;  %v2258_v40 = vmul.f32 %v4487_v18, %v5686_v21  ;;  %v4604_v18 = vld [vmem:[%s4764_s10 + $0x10] sm:$0xff] }
 0x45d   : > { %v4489_v48 = vpop.eup %4488 }
 0x45e   : > { %v2259_v24 = vmul.f32 %v4489_v48, %v5690_v60 }
 0x460   : > { %v2220_v58 = vpop.xlane.xlu0 %2219  ;;  %v2271_v44 = vpack.c.bf16 %v2259_v24, %v2258_v40  ;;  %v4605_v24 = vld [vmem:[%s4764_s10 + $0x18] sm:$0xff] }
 0x461   : > { %4494 = vrcp.f32 %v2220_v58 }
 0x462   : > { %4213 = vmatmul.mubr.msk.bf16.vlgmr.msra.gmra.mrb[52].mxu1 %vm2091_vm3, %v2271_v44  ;;  %v2223_v10 = vpop.xlane.xlu1 %2222 }
 0x463   : > { %v4491_v51 = vpop.eup %4490  ;;  %4223 = vmatpush3.bf16.msra.mxu1 %v6257_v46  ;;  %4496 = vrcp.f32 %v2223_v10  ;;  %4224 = vmatprep.mubr.msk.bf16.mxu1 %vm4675_vm2, %v6254_v53 }
 0x464   : > { %4234 = vmatprep.subr.bf16.mxu1 %v6254_v53  ;;  %v2260_v21 = vmul.f32 %v4491_v51, %v5696_v9 }
 0x465   : > { %v4493_v15 = vpop.eup %4492 }
 0x466   : > { %v2261_v60 = vmul.f32 %v4493_v15, %v5701_v8  ;;  %v4606_v15 = vld [vmem:[%s4764_s10 + $0x20] sm:$0xff] }
 0x467   : > { %v2226_v11 = vpop.xlane.xlu0 %2225 }
 0x468   : > { %4498 = vrcp.f32 %v2226_v11  ;;  %v2272_v63 = vpack.c.bf16 %v2261_v60, %v2260_v21 }
 0x469   : > { %v2229_v3 = vpop.xlane.xlu1 %2228 }
 0x46a   : > { %4219 = vmatmul.mubr.msk.bf16.vlgmr.msra.gmra.mrb[56].mxu0 %vm2091_vm3, %v2272_v63  ;;  %4500 = vrcp.f32 %v2229_v3  ;;  %v4607_v63 = vld [vmem:[%s4764_s10 + $0x28] sm:$0xff] }
 0x46b   : > { %v4495_v20 = vpop.eup %4494  ;;  %4229 = vmatpush3.bf16.msra.mxu0 %v6258_v12  ;;  %v2232_v30 = vpop.xlane.xlu0 %2231  ;;  %4230 = vmatprep.mubr.msk.bf16.mxu0 %vm4675_vm2, %v6254_v53 }
 0x46c   : > { %4502 = vrcp.f32 %v2232_v30  ;;  %4240 = vmatprep.subr.bf16.mxu0 %v6254_v53  ;;  %v2262_v1 = vmul.f32 %v4495_v20, %v5708_v19 }
 0x46d   : > { %v4497_v9 = vpop.eup %4496  ;;  %v2235_v8 = vpop.xlane.xlu1 %2234 }
 0x46e   : > { %v2263_v32 = vmul.f32 %v4497_v9, %v5712_v43  ;;  %4504 = vrcp.f32 %v2235_v8  ;;  %v4608_v8 = vld [vmem:[%s4764_s10 + $0x30] sm:$0xff] }
 0x470   : > { %v2273_v28 = vpack.c.bf16 %v2263_v32, %v2262_v1 }
 0x472   : > { %v4499_v27 = vpop.eup %4498  ;;  %4225 = vmatmul.mubr.msk.bf16.vlgmr.msra.gmra.mrb[56].mxu1 %vm2091_vm3, %v2273_v28 }
 0x473   : > { %4235 = vmatpush3.bf16.msra.mxu1 %v6259_v55  ;;  %4236 = vmatprep.mubr.msk.bf16.mxu1 %vm4675_vm2, %v6254_v53  ;;  %v2264_v13 = vmul.f32 %v4499_v27, %v5716_v26  ;;  %v1763_v26 = vsel %vm377_vm0, %v5389_v17, 0  ;;  %v1857_v17 = vsel %vm377_vm0, %v5419_v59, 0  ;;  %v5863_v59 = vld [vmem:[%s6230_s3 + $0x8] ss:$0 sm:$0xff]  ;;  %v4609_v27 = vld [vmem:[%s4764_s10 + $0x38] sm:$0xff] }
 0x474   : > { %v4501_v33 = vpop.eup %4500  ;;  %4246 = vmatprep.subr.bf16.mxu1 %v6254_v53 }
 0x475   : > { %v2265_v19 = vmul.f32 %v4501_v33, %v5720_v39 }
 0x476   : > { %v4503_v43 = vpop.eup %4502 }
 0x477   : > { %v2274_v16 = vpack.c.bf16 %v2265_v19, %v2264_v13  ;;  %v2266_v0 = vmul.f32 %v4503_v43, %v5724_v50 }
 0x478   : > { %v4505_v47 = vpop.eup %4504 }
 0x479   : > { %v2267_v4 = vmul.f32 %v4505_v47, %v5728_v57  ;;  %4231 = vmatmul.mubr.msk.bf16.vlgmr.msra.gmra.mrb[60].mxu0 %vm2091_vm3, %v2274_v16  ;;  %v4610_v16 = vld [vmem:[%s4764_s10 + $0x40] sm:$0xff] }
 0x47a   : > { %4241 = vmatpush3.bf16.xpose.msra.mxu0 %v1716_v14  ;;  %4242 = vmatprep.mubr.msk.bf16.mxu0 %vm4675_vm2, %v6254_v53  ;;  %v4611_v14 = vld [vmem:[%s4764_s10 + $0x48] sm:$0xff] }
 0x47b   : > { %v2275_v22 = vpack.c.bf16 %v2267_v4, %v2266_v0  ;;  %4252 = vmatprep.subr.bf16.mxu0 %v6254_v53 }
 0x47d   : > { %4237 = vmatmul.mubr.msk.bf16.vlgmr.msra.gmra.mrb[60].mxu1 %vm2091_vm3, %v2275_v22 }
 0x47e   : > { %4247 = vmatpush3.bf16.xpose.msra.mxu1 %v1763_v26  ;;  %4248 = vmatprep.mubr.msk.bf16.mxu1 %vm4675_vm2, %v6254_v53 }
 0x47f   : > { %4258 = vmatprep.subr.bf16.mxu1 %v6254_v53 }
 0x481   : > { %4243 = vmatmul.mubr.msk.bf16.vlgmr.msra.gmra.mrb[64].mxu0 %vm377_vm0, %v5355_v35  ;;  %v1904_v35 = vsel %vm377_vm0, %v5434_v25, 0 }
 0x482   : > { %4253 = vmatpush3.bf16.xpose.msra.mxu0 %v1810_v29  ;;  %4254 = vmatprep.mubr.msk.bf16.mxu0 %vm4675_vm2, %v6254_v53 }
 0x483   : > { %4264 = vmatprep.subr.bf16.mxu0 %v6254_v53 }
 0x485   : > { %4249 = vmatmul.mubr.msk.bf16.vlgmr.msra.gmra.mrb[64].mxu1 %vm377_vm0, %v5366_v49  ;;  %v1951_v49 = vsel %vm377_vm0, %v5449_v38, 0 }
 0x486   : > { %4259 = vmatpush3.bf16.xpose.msra.mxu1 %v1857_v17  ;;  %4260 = vmatprep.mubr.msk.bf16.mxu1 %vm4675_vm2, %v6254_v53 }
 0x487   : > { %4270 = vmatprep.subr.bf16.mxu1 %v6254_v53 }
 0x489   : > { %4255 = vmatmul.mubr.msk.bf16.vlgmr.msra.gmra.mrb[68].mxu0 %vm377_vm0, %v5380_v6  ;;  %v1998_v6 = vsel %vm377_vm0, %v5470_v54, 0 }
 0x48a   : > { %4265 = vmatpush3.bf16.xpose.msra.mxu0 %v1904_v35  ;;  %4266 = vmatprep.mubr.msk.bf16.mxu0 %vm4675_vm2, %v6254_v53 }
 0x48b   : > { %4276 = vmatprep.subr.bf16.mxu0 %v6254_v53 }
 0x48d   : > { %4261 = vmatmul.mubr.msk.bf16.vlgmr.msra.gmra.mrb[68].mxu1 %vm377_vm0, %v5395_v52  ;;  %v2045_v52 = vsel %vm377_vm0, %v5484_v56, 0 }
 0x48e   : > { %4271 = vmatpush3.bf16.xpose.msra.mxu1 %v1951_v49  ;;  %4272 = vmatprep.mubr.msk.bf16.mxu1 %vm4675_vm2, %v6254_v53  ;;  %v4612_v49 = vld [vmem:[%s4764_s10 + $0x50] sm:$0xff] }
 0x48f   : > { %4282 = vmatprep.subr.bf16.mxu1 %v6254_v53 }
 0x491   : > { %4267 = vmatmul.mubr.msk.bf16.vlgmr.msra.gmra.mrb[72].mxu0 %vm377_vm0, %v5410_v41  ;;  %v6261_v41 = vpack.c.bf16 %v5506_v2, %v5511_v61 }
 0x492   : > { %4277 = vmatpush3.bf16.xpose.msra.mxu0 %v1998_v6  ;;  %4278 = vmatprep.mubr.msk.bf16.mxu0 %vm4675_vm2, %v6254_v53 }
 0x493   : > { %4288 = vmatprep.subr.bf16.mxu0 %v6254_v53 }
 0x495   : > { %4273 = vmatmul.mubr.msk.bf16.vlgmr.msra.gmra.mrb[72].mxu1 %vm377_vm0, %v5425_v37 }
 0x496   : > { %4283 = vmatpush3.bf16.xpose.msra.mxu1 %v2045_v52  ;;  %4284 = vmatprep.mubr.msk.bf16.mxu1 %vm4675_vm2, %v6254_v53 }
 0x497   : > { %4294 = vmatprep.subr.bf16.mxu1 %v6254_v53 }
 0x499   : > { %4279 = vmatmul.mubr.msk.bf16.vlgmr.msra.gmra.mrb[76].mxu0 %vm377_vm0, %v5440_v45 }
 0x49a   : > { %4289 = vmatpush3.bf16.msra.mxu0 %v6260_v62  ;;  %4290 = vmatprep.mubr.msk.bf16.mxu0 %vm4675_vm2, %v6254_v53 }
 0x49b   : > { %4300 = vmatprep.subr.bf16.mxu0 %v6254_v53 }
 0x49d   : > { %4285 = vmatmul.mubr.msk.bf16.vlgmr.msra.gmra.mrb[76].mxu1 %vm377_vm0, %v5460_v5  ;;  %v4602_v5 = vld [vmem:[%s4764_s10] sm:$0xff] }
 0x49e   : > { %4295 = vmatpush3.bf16.msra.mxu1 %v6261_v41  ;;  %4296 = vmatprep.mubr.msk.bf16.mxu1 %vm4675_vm2, %v6254_v53  ;;  %v4613_v41 = vld [vmem:[%s4764_s10 + $0x58] sm:$0xff] }
 0x49f   : > { %4306 = vmatprep.subr.bf16.mxu1 %v6254_v53 }
 0x51d   : > { %v2313_v37 = vpop.f32.mrb[48].mxu0 }
 0x51e   : > { %v2632_v25 = vmul.f32 %v5863_v59, %v2313_v37  ;;  %v4196_v45 = vpop.f32.mrb[49].mxu0 }
 0x51f   : > { %v2316_v38 = vpop.f32.mrb[50].mxu0 }
 0x520   : > { %v2648_v54 = vadd.f32 %v4602_v5, %v2632_v25  ;;  %v2633_v56 = vmul.f32 %v5863_v59, %v2316_v38  ;;  %v4197_v23 = vpop.f32.mrb[51].mxu0 }
 0x522   : > { %2664 = vst.msk [vmem:[%s5870_s27] sm:$0xff] %vm377_vm0, %v2648_v54  ;;  %v2649_v2 = vadd.f32 %v4603_v7, %v2633_v56  ;;  %v4614_v54 = vld [vmem:[%s4764_s10 + $0x60] sm:$0xff] }
 0x524   : > { %2665 = vst.msk [vmem:[%s5870_s27 + $0x8] sm:$0xff] %vm377_vm0, %v2649_v2 }
 0x525   : > { %v2357_v61 = vpop.f32.mrb[48].mxu1 }
 0x526   : > { %v2634_v39 = vmul.f32 %v5863_v59, %v2357_v61  ;;  %v4202_v50 = vpop.f32.mrb[49].mxu1  ;;  %v4615_v61 = vld [vmem:[%s4764_s10 + $0x68] sm:$0xff] }
 0x527   : > { %v2360_v57 = vpop.f32.mrb[50].mxu1 }
 0x528   : > { %v2650_v34 = vadd.f32 %v4604_v18, %v2634_v39  ;;  %v2635_v48 = vmul.f32 %v5863_v59, %v2360_v57  ;;  %v4203_v40 = vpop.f32.mrb[51].mxu1 }
 0x52a   : > { %2666 = vst.msk [vmem:[%s5870_s27 + $0x10] sm:$0xff] %vm377_vm0, %v2650_v34  ;;  %v2651_v58 = vadd.f32 %v4605_v24, %v2635_v48  ;;  %v4616_v34 = vld [vmem:[%s4764_s10 + $0x70] sm:$0xff] }
 0x52c   : > { %2667 = vst.msk [vmem:[%s5870_s27 + $0x18] sm:$0xff] %vm377_vm0, %v2651_v58 }
 0x52d   : > { %v2401_v44 = vpop.f32.mrb[52].mxu0 }
 0x52e   : > { %v2636_v10 = vmul.f32 %v5863_v59, %v2401_v44  ;;  %v4208_v51 = vpop.f32.mrb[53].mxu0  ;;  %v4617_v44 = vld [vmem:[%s4764_s10 + $0x78] sm:$0xff] }
 0x52f   : > { %v2404_v46 = vpop.f32.mrb[54].mxu0 }
 0x530   : > { %v2652_v21 = vadd.f32 %v4606_v15, %v2636_v10  ;;  %v2637_v60 = vmul.f32 %v5863_v59, %v2404_v46  ;;  %v4209_v11 = vpop.f32.mrb[55].mxu0 }
 0x532   : > { %2668 = vst.msk [vmem:[%s5870_s27 + $0x20] sm:$0xff] %vm377_vm0, %v2652_v21  ;;  %v2653_v3 = vadd.f32 %v4607_v63, %v2637_v60 }
 0x534   : > { %2669 = vst.msk [vmem:[%s5870_s27 + $0x28] sm:$0xff] %vm377_vm0, %v2653_v3 }
 0x535   : > { %v2445_v20 = vpop.f32.mrb[52].mxu1 }
 0x536   : > { %v2638_v12 = vmul.f32 %v5863_v59, %v2445_v20  ;;  %v4214_v30 = vpop.f32.mrb[53].mxu1 }
 0x537   : > { %v2448_v9 = vpop.f32.mrb[54].mxu1 }
 0x538   : > { %v2654_v1 = vadd.f32 %v4608_v8, %v2638_v12  ;;  %v2639_v32 = vmul.f32 %v5863_v59, %v2448_v9  ;;  %v4215_v28 = vpop.f32.mrb[55].mxu1 }
 0x53a   : > { %2670 = vst.msk [vmem:[%s5870_s27 + $0x30] sm:$0xff] %vm377_vm0, %v2654_v1  ;;  %v2655_v55 = vadd.f32 %v4609_v27, %v2639_v32 }
 0x53c   : > { %2671 = vst.msk [vmem:[%s5870_s27 + $0x38] sm:$0xff] %vm377_vm0, %v2655_v55 }
 0x53d   : > { %v2489_v33 = vpop.f32.mrb[56].mxu0 }
 0x53e   : > { %v2640_v13 = vmul.f32 %v5863_v59, %v2489_v33  ;;  %v4220_v19 = vpop.f32.mrb[57].mxu0 }
 0x53f   : > { %v2492_v43 = vpop.f32.mrb[58].mxu0 }
 0x540   : > { %v2656_v47 = vadd.f32 %v4610_v16, %v2640_v13  ;;  %v2641_v0 = vmul.f32 %v5863_v59, %v2492_v43  ;;  %v4221_v4 = vpop.f32.mrb[59].mxu0 }
 0x542   : > { %2672 = vst.msk [vmem:[%s5870_s27 + $0x40] sm:$0xff] %vm377_vm0, %v2656_v47  ;;  %v2657_v22 = vadd.f32 %v4611_v14, %v2641_v0 }
 0x544   : > { %2673 = vst.msk [vmem:[%s5870_s27 + $0x48] sm:$0xff] %vm377_vm0, %v2657_v22 }
 0x545   : > { %v2533_v26 = vpop.f32.mrb[56].mxu1 }
 0x546   : > { %v2642_v29 = vmul.f32 %v5863_v59, %v2533_v26  ;;  %v4226_v17 = vpop.f32.mrb[57].mxu1 }
 0x547   : > { %v2536_v35 = vpop.f32.mrb[58].mxu1 }
 0x548   : > { %v2658_v6 = vadd.f32 %v4612_v49, %v2642_v29  ;;  %v2643_v52 = vmul.f32 %v5863_v59, %v2536_v35  ;;  %v4227_v62 = vpop.f32.mrb[59].mxu1 }
 0x54a   : > { %2674 = vst.msk [vmem:[%s5870_s27 + $0x50] sm:$0xff] %vm377_vm0, %v2658_v6  ;;  %v2659_v37 = vadd.f32 %v4613_v41, %v2643_v52 }
 0x54c   : > { %2675 = vst.msk [vmem:[%s5870_s27 + $0x58] sm:$0xff] %vm377_vm0, %v2659_v37  ;;  %v2577_v25 = vpop.f32.mrb[60].mxu0 }
 0x54d   : > { %v2644_v45 = vmul.f32 %v5863_v59, %v2577_v25  ;;  %v4232_v38 = vpop.f32.mrb[61].mxu0 }
 0x54e   : > { %v2580_v5 = vpop.f32.mrb[62].mxu0 }
 0x54f   : > { %v2660_v56 = vadd.f32 %v4614_v54, %v2644_v45  ;;  %v2645_v23 = vmul.f32 %v5863_v59, %v2580_v5  ;;  %v4233_v7 = vpop.f32.mrb[63].mxu0 }
 0x550   : > { %v2621_v2 = vpop.f32.mrb[60].mxu1 }
 0x551   : > { %2676 = vst.msk [vmem:[%s5870_s27 + $0x60] sm:$0xff] %vm377_vm0, %v2660_v56  ;;  %v2661_v39 = vadd.f32 %v4615_v61, %v2645_v23  ;;  %v2646_v50 = vmul.f32 %v5863_v59, %v2621_v2  ;;  %v4238_v57 = vpop.f32.mrb[61].mxu1 }
 0x552   : > { %v2624_v18 = vpop.f32.mrb[62].mxu1 }
 0x553   : > { %2677 = vst.msk [vmem:[%s5870_s27 + $0x68] sm:$0xff] %vm377_vm0, %v2661_v39  ;;  %v2662_v48 = vadd.f32 %v4616_v34, %v2646_v50  ;;  %v2647_v40 = vmul.f32 %v5863_v59, %v2624_v18  ;;  %v4239_v24 = vpop.f32.mrb[63].mxu1 }
 0x554   : > { %v5930_v58 = vpop.f32.mrb[64].mxu0 }
 0x555   : > { %2678 = vst.msk [vmem:[%s5870_s27 + $0x70] sm:$0xff] %vm377_vm0, %v2662_v48  ;;  %v2663_v10 = vadd.f32 %v4617_v44, %v2647_v40  ;;  %v4244_v51 = vpop.f32.mrb[65].mxu0  ;;  %v3008_v46 = vsel %vm2091_vm3, %v5930_v58, -inf }
 0x556   : > { %3009 = vmax.xlane.f32.xlu0 %v3008_v46  ;;  %v5937_v15 = vpop.f32.mrb[66].mxu0 }
 0x557   : > { %2679 = vst.msk [vmem:[%s5870_s27 + $0x78] sm:$0xff] %vm377_vm0, %v2663_v10  ;;  %v4245_v21 = vpop.f32.mrb[67].mxu0  ;;  %v3011_v59 = vsel %vm2091_vm3, %v5937_v15, -inf }
 0x558   : > { %3012 = vmax.xlane.f32.xlu1 %v3011_v59  ;;  %v5943_v60 = vpop.f32.mrb[64].mxu1 }
 0x559   : > { %v4250_v11 = vpop.f32.mrb[65].mxu1  ;;  %v3014_v63 = vsel %vm2091_vm3, %v5943_v60, -inf }
 0x55a   : > { %3015 = vmax.xlane.f32.xlu0 %v3014_v63  ;;  %v5947_v3 = vpop.f32.mrb[66].mxu1 }
 0x55b   : > { %v4251_v20 = vpop.f32.mrb[67].mxu1  ;;  %v3017_v12 = vsel %vm2091_vm3, %v5947_v3, -inf }
 0x55c   : > { %v5951_v30 = vpop.f32.mrb[68].mxu0  ;;  %3018 = vmax.xlane.f32.xlu1 %v3017_v12 }
 0x55d   : > { %v4256_v9 = vpop.f32.mrb[69].mxu0  ;;  %v3020_v8 = vsel %vm2091_vm3, %v5951_v30, -inf }
 0x55e   : > { %v5955_v1 = vpop.f32.mrb[70].mxu0  ;;  %3021 = vmax.xlane.f32.xlu0 %v3020_v8 }
 0x55f   : > { %v4257_v32 = vpop.f32.mrb[71].mxu0  ;;  %v3023_v28 = vsel %vm2091_vm3, %v5955_v1, -inf }
 0x560   : > { %3024 = vmax.xlane.f32.xlu1 %v3023_v28  ;;  %v5959_v27 = vpop.f32.mrb[68].mxu1 }
 0x561   : > { %v4262_v55 = vpop.f32.mrb[69].mxu1  ;;  %v3026_v33 = vsel %vm2091_vm3, %v5959_v27, -inf }
 0x562   : > { %3027 = vmax.xlane.f32.xlu0 %v3026_v33  ;;  %v5963_v13 = vpop.f32.mrb[70].mxu1 }
 0x563   : > { %v4263_v19 = vpop.f32.mrb[71].mxu1  ;;  %v3029_v43 = vsel %vm2091_vm3, %v5963_v13, -inf }
 0x564   : > { %v5967_v16 = vpop.f32.mrb[72].mxu0  ;;  %3030 = vmax.xlane.f32.xlu1 %v3029_v43 }
 0x565   : > { %v4268_v47 = vpop.f32.mrb[73].mxu0  ;;  %v3032_v0 = vsel %vm2091_vm3, %v5967_v16, -inf }
 0x566   : > { %v5971_v4 = vpop.f32.mrb[74].mxu0  ;;  %3033 = vmax.xlane.f32.xlu0 %v3032_v0 }
 0x567   : > { %v4269_v14 = vpop.f32.mrb[75].mxu0  ;;  %v3035_v22 = vsel %vm2091_vm3, %v5971_v4, -inf }
 0x568   : > { %3036 = vmax.xlane.f32.xlu1 %v3035_v22  ;;  %v5975_v26 = vpop.f32.mrb[72].mxu1 }
 0x569   : > { %v4274_v29 = vpop.f32.mrb[73].mxu1  ;;  %v3038_v17 = vsel %vm2091_vm3, %v5975_v26, -inf }
 0x56a   : > { %3039 = vmax.xlane.f32.xlu0 %v3038_v17  ;;  %v5979_v35 = vpop.f32.mrb[74].mxu1 }
 0x56b   : > { %v4275_v49 = vpop.f32.mrb[75].mxu1  ;;  %v3041_v6 = vsel %vm2091_vm3, %v5979_v35, -inf }
 0x56c   : > { %v5983_v52 = vpop.f32.mrb[76].mxu0  ;;  %3042 = vmax.xlane.f32.xlu1 %v3041_v6 }
 0x56d   : > { %v4280_v62 = vpop.f32.mrb[77].mxu0  ;;  %v3044_v41 = vsel %vm2091_vm3, %v5983_v52, -inf }
 0x56e   : > { %v5987_v37 = vpop.f32.mrb[78].mxu0  ;;  %3045 = vmax.xlane.f32.xlu0 %v3044_v41 }
 0x56f   : > { %v4281_v25 = vpop.f32.mrb[79].mxu0  ;;  %v3047_v45 = vsel %vm2091_vm3, %v5987_v37, -inf }
 0x570   : > { %3048 = vmax.xlane.f32.xlu1 %v3047_v45  ;;  %v5991_v38 = vpop.f32.mrb[76].mxu1 }
 0x571   : > { %v4286_v5 = vpop.f32.mrb[77].mxu1  ;;  %v3050_v54 = vsel %vm2091_vm3, %v5991_v38, -inf }
 0x572   : > { %3051 = vmax.xlane.f32.xlu0 %v3050_v54  ;;  %v5995_v56 = vpop.f32.mrb[78].mxu1 }
 0x573   : > { %v4287_v23 = vpop.f32.mrb[79].mxu1  ;;  %v3053_v7 = vsel %vm2091_vm3, %v5995_v56, -inf }
 0x574   : > { %3054 = vmax.xlane.f32.xlu1 %v3053_v7 }
 0x5e3   : > { %v3010_v2 = vpop.xlane.xlu0 %3009 }
 0x5e4   : > { %v3056_v61 = vsub.f32 %v5930_v58, %v3010_v2 }
 0x5e5   : > { %v3013_v39 = vpop.xlane.xlu1 %3012 }
 0x5e6   : > { %v3072_v50 = vmul.f32 1.442695, %v3056_v61  ;;  %v3057_v57 = vsub.f32 %v5937_v15, %v3013_v39 }
 0x5e7   : > { %v3016_v18 = vpop.xlane.xlu0 %3015 }
 0x5e8   : > { %4506 = vpow2.f32 %v3072_v50  ;;  %v3074_v34 = vmul.f32 1.442695, %v3057_v57  ;;  %v3058_v48 = vsub.f32 %v5943_v60, %v3016_v18 }
 0x5e9   : > { %v3019_v40 = vpop.xlane.xlu1 %3018 }
 0x5ea   : > { %4508 = vpow2.f32 %v3074_v34  ;;  %v3076_v24 = vmul.f32 1.442695, %v3058_v48  ;;  %v3059_v44 = vsub.f32 %v5947_v3, %v3019_v40 }
 0x5eb   : > { %v3022_v10 = vpop.xlane.xlu0 %3021 }
 0x5ec   : > { %4510 = vpow2.f32 %v3076_v24  ;;  %v3078_v51 = vmul.f32 1.442695, %v3059_v44  ;;  %v3060_v46 = vsub.f32 %v5951_v30, %v3022_v10 }
 0x5ed   : > { %v3025_v58 = vpop.xlane.xlu1 %3024 }
 0x5ee   : > { %4512 = vpow2.f32 %v3078_v51  ;;  %v3080_v21 = vmul.f32 1.442695, %v3060_v46  ;;  %v3061_v15 = vsub.f32 %v5955_v1, %v3025_v58 }
 0x5ef   : > { %v3028_v59 = vpop.xlane.xlu0 %3027 }
 0x5f0   : > { %4514 = vpow2.f32 %v3080_v21  ;;  %v3082_v11 = vmul.f32 1.442695, %v3061_v15  ;;  %v3062_v60 = vsub.f32 %v5959_v27, %v3028_v59 }
 0x5f1   : > { %v3031_v63 = vpop.xlane.xlu1 %3030 }
 0x5f2   : > { %v6006_v20 = vpop.eup %4506  ;;  %4516 = vpow2.f32 %v3082_v11  ;;  %v3084_v3 = vmul.f32 1.442695, %v3062_v60  ;;  %v3063_v12 = vsub.f32 %v5963_v13, %v3031_v63 }
 0x5f3   : > { %v3034_v9 = vpop.xlane.xlu0 %3033  ;;  %v3104_v30 = vsel %vm2091_vm3, %v6006_v20, 0.0 }
 0x5f4   : > { %v6011_v8 = vpop.eup %4508  ;;  %4518 = vpow2.f32 %v3084_v3  ;;  %v3086_v1 = vmul.f32 1.442695, %v3063_v12  ;;  %v3064_v32 = vsub.f32 %v5967_v16, %v3034_v9  ;;  %3105 = vadd.xlane.f32.xlu0 %v3104_v30 }
 0x5f5   : > { %v3037_v28 = vpop.xlane.xlu1 %3036  ;;  %v3107_v27 = vsel %vm2091_vm3, %v6011_v8, 0.0 }
 0x5f6   : > { %v6016_v55 = vpop.eup %4510  ;;  %4520 = vpow2.f32 %v3086_v1  ;;  %v3088_v33 = vmul.f32 1.442695, %v3064_v32  ;;  %v3065_v13 = vsub.f32 %v5971_v4, %v3037_v28  ;;  %3108 = vadd.xlane.f32.xlu1 %v3107_v27 }
 0x5f7   : > { %v3040_v19 = vpop.xlane.xlu0 %3039  ;;  %v3110_v43 = vsel %vm2091_vm3, %v6016_v55, 0.0 }
 0x5f8   : > { %v6021_v47 = vpop.eup %4512  ;;  %4522 = vpow2.f32 %v3088_v33  ;;  %v3090_v16 = vmul.f32 1.442695, %v3065_v13  ;;  %v3066_v0 = vsub.f32 %v5975_v26, %v3040_v19  ;;  %3111 = vadd.xlane.f32.xlu0 %v3110_v43 }
 0x5f9   : > { %v3043_v14 = vpop.xlane.xlu1 %3042  ;;  %v3113_v22 = vsel %vm2091_vm3, %v6021_v47, 0.0 }
 0x5fa   : > { %v6026_v29 = vpop.eup %4514  ;;  %4524 = vpow2.f32 %v3090_v16  ;;  %v3092_v4 = vmul.f32 1.442695, %v3066_v0  ;;  %v3067_v17 = vsub.f32 %v5979_v35, %v3043_v14  ;;  %3114 = vadd.xlane.f32.xlu1 %v3113_v22 }
 0x5fb   : > { %v3046_v49 = vpop.xlane.xlu0 %3045  ;;  %v3116_v6 = vsel %vm2091_vm3, %v6026_v29, 0.0 }
 0x5fc   : > { %v6031_v62 = vpop.eup %4516  ;;  %4526 = vpow2.f32 %v3092_v4  ;;  %v3094_v26 = vmul.f32 1.442695, %v3067_v17  ;;  %v3068_v41 = vsub.f32 %v5983_v52, %v3046_v49  ;;  %3117 = vadd.xlane.f32.xlu0 %v3116_v6 }
 0x5fd   : > { %v3049_v25 = vpop.xlane.xlu1 %3048  ;;  %v3119_v45 = vsel %vm2091_vm3, %v6031_v62, 0.0 }
 0x5fe   : > { %v6036_v5 = vpop.eup %4518  ;;  %4528 = vpow2.f32 %v3094_v26  ;;  %v3096_v35 = vmul.f32 1.442695, %v3068_v41  ;;  %v3069_v54 = vsub.f32 %v5987_v37, %v3049_v25  ;;  %3120 = vadd.xlane.f32.xlu1 %v3119_v45 }
 0x5ff   : > { %v3052_v23 = vpop.xlane.xlu0 %3051  ;;  %v3122_v7 = vsel %vm2091_vm3, %v6036_v5, 0.0 }
 0x600   : > { %v6041_v2 = vpop.eup %4520  ;;  %4530 = vpow2.f32 %v3096_v35  ;;  %v3098_v52 = vmul.f32 1.442695, %v3069_v54  ;;  %v3070_v61 = vsub.f32 %v5991_v38, %v3052_v23  ;;  %3123 = vadd.xlane.f32.xlu0 %v3122_v7 }
 0x601   : > { %v3055_v39 = vpop.xlane.xlu1 %3054  ;;  %v3125_v50 = vsel %vm2091_vm3, %v6041_v2, 0.0 }
 0x602   : > { %v6046_v57 = vpop.eup %4522  ;;  %4532 = vpow2.f32 %v3098_v52  ;;  %v3100_v37 = vmul.f32 1.442695, %v3070_v61  ;;  %v3071_v18 = vsub.f32 %v5995_v56, %v3055_v39  ;;  %3126 = vadd.xlane.f32.xlu1 %v3125_v50  ;;  %v6266_v52 = vld [vmem:[#allocation4_spill] sm:$0xff] }
 0x603   : > { %v3128_v34 = vsel %vm2091_vm3, %v6046_v57, 0.0 }
 0x604   : > { %v6051_v48 = vpop.eup %4524  ;;  %4534 = vpow2.f32 %v3100_v37  ;;  %v3102_v40 = vmul.f32 1.442695, %v3071_v18  ;;  %3129 = vadd.xlane.f32.xlu0 %v3128_v34 }
 0x605   : > { %v3131_v38 = vsel %vm2091_vm3, %v6051_v48, 0.0 }
 0x606   : > { %v6055_v24 = vpop.eup %4526  ;;  %4536 = vpow2.f32 %v3102_v40  ;;  %3132 = vadd.xlane.f32.xlu1 %v3131_v38  ;;  %v6268_v40 = vld [vmem:[#allocation5_spill] sm:$0xff]  ;;  %v6269_v38 = vld [vmem:[#allocation6_spill] sm:$0xff] }
 0x607   : > { %v3134_v44 = vsel %vm2091_vm3, %v6055_v24, 0.0 }
 0x608   : > { %v6059_v56 = vpop.eup %4528  ;;  %3135 = vadd.xlane.f32.xlu0 %v3134_v44  ;;  %v6270_v44 = vpack.c.bf16 %v6268_v40, %v6269_v38  ;;  %v4625_v40 = vld [vmem:[%s4742_s7 + $0x38] sm:$0xff] }
 0x609   : > { %v3137_v10 = vsel %vm2091_vm3, %v6059_v56, 0.0 }
 0x60a   : > { %v6063_v51 = vpop.eup %4530  ;;  %3138 = vadd.xlane.f32.xlu1 %v3137_v10 }
 0x60b   : > { %v3140_v46 = vsel %vm2091_vm3, %v6063_v51, 0.0 }
 0x60c   : > { %v6067_v58 = vpop.eup %4532  ;;  %3141 = vadd.xlane.f32.xlu0 %v3140_v46 }
 0x60d   : > { %v3143_v21 = vsel %vm2091_vm3, %v6067_v58, 0.0 }
 0x60e   : > { %v6071_v15 = vpop.eup %4534  ;;  %3144 = vadd.xlane.f32.xlu1 %v3143_v21 }
 0x60f   : > { %v3146_v59 = vsel %vm2091_vm3, %v6071_v15, 0.0 }
 0x610   : > { %v6075_v11 = vpop.eup %4536  ;;  %3147 = vadd.xlane.f32.xlu0 %v3146_v59  ;;  %v6271_v59 = vld [vmem:[#allocation7_spill] sm:$0xff] }
 0x611   : > { %v3149_v60 = vsel %vm2091_vm3, %v6075_v11, 0.0 }
 0x612   : > { %3150 = vadd.xlane.f32.xlu1 %v3149_v60  ;;  %v6272_v60 = vld [vmem:[#allocation8_spill] sm:$0xff] }
 0x681   : > { %v3106_v63 = vpop.xlane.xlu0 %3105 }
 0x682   : > { %4538 = vrcp.f32 %v3106_v63  ;;  %v6273_v63 = vpack.c.bf16 %v6271_v59, %v6272_v60 }
 0x683   : > { %v3109_v3 = vpop.xlane.xlu1 %3108 }
 0x684   : > { %4540 = vrcp.f32 %v3109_v3 }
 0x685   : > { %v3112_v12 = vpop.xlane.xlu0 %3111 }
 0x686   : > { %4542 = vrcp.f32 %v3112_v12 }
 0x687   : > { %v3115_v9 = vpop.xlane.xlu1 %3114 }
 0x688   : > { %4544 = vrcp.f32 %v3115_v9 }
 0x689   : > { %v3118_v30 = vpop.xlane.xlu0 %3117 }
 0x68a   : > { %4546 = vrcp.f32 %v3118_v30 }
 0x68b   : > { %v3121_v1 = vpop.xlane.xlu1 %3120 }
 0x68c   : > { %v4539_v32 = vpop.eup %4538  ;;  %4548 = vrcp.f32 %v3121_v1  ;;  %v6275_v1 = vld [vmem:[#allocation10_spill] sm:$0xff] }
 0x68d   : > { %v3124_v28 = vpop.xlane.xlu0 %3123  ;;  %v3168_v33 = vmul.f32 %v4539_v32, %v6006_v20  ;;  %v6262_v20 = vpack.c.bf16 %v5520_v42, %v5525_v36  ;;  %v6263_v42 = vld [vmem:[#allocation2_spill] sm:$0xff] }
 0x68e   : > { %v4541_v27 = vpop.eup %4540  ;;  %4550 = vrcp.f32 %v3124_v28  ;;  %v6264_v36 = vpack.c.bf16 %v5529_v31, %v6263_v42  ;;  %v6265_v31 = vld [vmem:[#allocation3_spill] sm:$0xff] }
 0x68f   : > { %v3169_v13 = vmul.f32 %v4541_v27, %v6011_v8  ;;  %v3127_v19 = vpop.xlane.xlu1 %3126  ;;  %v6267_v61 = vpack.c.bf16 %v6265_v31, %v6266_v52  ;;  %v4623_v31 = vld [vmem:[%s4742_s7 + $0x28] sm:$0xff] }
 0x690   : > { %v4543_v43 = vpop.eup %4542  ;;  %4552 = vrcp.f32 %v3127_v19 }
 0x691   : > { %v3130_v16 = vpop.xlane.xlu0 %3129  ;;  %v3184_v0 = vpack.c.bf16 %v3169_v13, %v3168_v33  ;;  %v3170_v22 = vmul.f32 %v4543_v43, %v6016_v55  ;;  %v6140_v13 = vld [vmem:[%s6230_s3 + $0x9] ss:$0 sm:$0xff] }
 0x692   : > { %v4545_v14 = vpop.eup %4544  ;;  %4554 = vrcp.f32 %v3130_v16 }
 0x693   : > { %v3171_v4 = vmul.f32 %v4545_v14, %v6021_v47  ;;  %4291 = vmatmul.mubr.msk.bf16.vlgmr.msra.gmra.mrb[80].mxu0 %vm2091_vm3, %v3184_v0  ;;  %v3133_v17 = vpop.xlane.xlu1 %3132 }
 0x694   : > { %v4547_v49 = vpop.eup %4546  ;;  %4301 = vmatpush3.bf16.msra.mxu0 %v6262_v20  ;;  %4556 = vrcp.f32 %v3133_v17  ;;  %4302 = vmatprep.mubr.msk.bf16.mxu0 %vm4675_vm2, %v6254_v53 }
 0x695   : > { %v3136_v8 = vpop.xlane.xlu0 %3135  ;;  %v3185_v6 = vpack.c.bf16 %v3171_v4, %v3170_v22  ;;  %4312 = vmatprep.subr.bf16.mxu0 %v6254_v53  ;;  %v3172_v55 = vmul.f32 %v4547_v49, %v6026_v29  ;;  %v4619_v4 = vld [vmem:[%s4742_s7 + $0x8] sm:$0xff] }
 0x696   : > { %v4549_v26 = vpop.eup %4548  ;;  %4558 = vrcp.f32 %v3136_v8 }
 0x697   : > { %v3173_v47 = vmul.f32 %v4549_v26, %v6031_v62  ;;  %4297 = vmatmul.mubr.msk.bf16.vlgmr.msra.gmra.mrb[80].mxu1 %vm2091_vm3, %v3185_v6  ;;  %v3139_v41 = vpop.xlane.xlu1 %3138  ;;  %v4620_v6 = vld [vmem:[%s4742_s7 + $0x10] sm:$0xff] }
 0x698   : > { %v4551_v25 = vpop.eup %4550  ;;  %4307 = vmatpush3.bf16.msra.mxu1 %v6264_v36  ;;  %4560 = vrcp.f32 %v3139_v41  ;;  %4308 = vmatprep.mubr.msk.bf16.mxu1 %vm4675_vm2, %v6254_v53 }
 0x699   : > { %v3142_v45 = vpop.xlane.xlu0 %3141  ;;  %v3186_v35 = vpack.c.bf16 %v3173_v47, %v3172_v55  ;;  %4318 = vmatprep.subr.bf16.mxu1 %v6254_v53  ;;  %v3174_v29 = vmul.f32 %v4551_v25, %v6036_v5  ;;  %v4621_v25 = vld [vmem:[%s4742_s7 + $0x18] sm:$0xff] }
 0x69a   : > { %v4553_v54 = vpop.eup %4552  ;;  %4562 = vrcp.f32 %v3142_v45 }
 0x69b   : > { %v3175_v62 = vmul.f32 %v4553_v54, %v6041_v2  ;;  %4303 = vmatmul.mubr.msk.bf16.vlgmr.msra.gmra.mrb[84].mxu0 %vm2091_vm3, %v3186_v35  ;;  %v3145_v23 = vpop.xlane.xlu1 %3144  ;;  %v4622_v54 = vld [vmem:[%s4742_s7 + $0x20] sm:$0xff] }
 0x69c   : > { %v4555_v7 = vpop.eup %4554  ;;  %4313 = vmatpush3.bf16.msra.mxu0 %v6267_v61  ;;  %4564 = vrcp.f32 %v3145_v23  ;;  %4314 = vmatprep.mubr.msk.bf16.mxu0 %vm4675_vm2, %v6254_v53 }
 0x69d   : > { %v3148_v39 = vpop.xlane.xlu0 %3147  ;;  %v3187_v50 = vpack.c.bf16 %v3175_v62, %v3174_v29  ;;  %4324 = vmatprep.subr.bf16.mxu0 %v6254_v53  ;;  %v3176_v5 = vmul.f32 %v4555_v7, %v6046_v57 }
 0x69e   : > { %v4557_v37 = vpop.eup %4556  ;;  %4566 = vrcp.f32 %v3148_v39 }
 0x69f   : > { %v3177_v2 = vmul.f32 %v4557_v37, %v6051_v48  ;;  %4309 = vmatmul.mubr.msk.bf16.vlgmr.msra.gmra.mrb[84].mxu1 %vm2091_vm3, %v3187_v50  ;;  %v3151_v18 = vpop.xlane.xlu1 %3150  ;;  %v4624_v37 = vld [vmem:[%s4742_s7 + $0x30] sm:$0xff] }
 0x6a0   : > { %v4559_v34 = vpop.eup %4558  ;;  %4319 = vmatpush3.bf16.msra.mxu1 %v6270_v44  ;;  %4568 = vrcp.f32 %v3151_v18  ;;  %4320 = vmatprep.mubr.msk.bf16.mxu1 %vm4675_vm2, %v6254_v53 }
 0x6a1   : > { %v3188_v10 = vpack.c.bf16 %v3177_v2, %v3176_v5  ;;  %4330 = vmatprep.subr.bf16.mxu1 %v6254_v53  ;;  %v3178_v57 = vmul.f32 %v4559_v34, %v6055_v24 }
 0x6a2   : > { %v4561_v46 = vpop.eup %4560 }
 0x6a3   : > { %v3179_v48 = vmul.f32 %v4561_v46, %v6059_v56  ;;  %4315 = vmatmul.mubr.msk.bf16.vlgmr.msra.gmra.mrb[88].mxu0 %vm2091_vm3, %v3188_v10  ;;  %v6274_v56 = vld [vmem:[#allocation9_spill] sm:$0xff] }
 0x6a4   : > { %v4563_v21 = vpop.eup %4562  ;;  %4325 = vmatpush3.bf16.msra.mxu0 %v6273_v63  ;;  %4326 = vmatprep.mubr.msk.bf16.mxu0 %vm4675_vm2, %v6254_v53  ;;  %v6276_v32 = vpack.c.bf16 %v6274_v56, %v6275_v1  ;;  %v4627_v63 = vld [vmem:[%s4742_s7 + $0x48] sm:$0xff] }
 0x6a5   : > { %v3189_v3 = vpack.c.bf16 %v3179_v48, %v3178_v57  ;;  %v3180_v9 = vmul.f32 %v4563_v21, %v6063_v51  ;;  %v4626_v57 = vld [vmem:[%s4742_s7 + $0x40] sm:$0xff] }
 0x6a6   : > { %v4565_v12 = vpop.eup %4564 }
 0x6a7   : > { %v3181_v30 = vmul.f32 %v4565_v12, %v6067_v58  ;;  %4321 = vmatmul.mubr.msk.bf16.vlgmr.msra.gmra.mrb[88].mxu1 %vm2091_vm3, %v3189_v3 }
 0x6a8   : > { %v4567_v24 = vpop.eup %4566  ;;  %4331 = vmatpush3.bf16.msra.mxu1 %v6276_v32  ;;  %4332 = vmatprep.mubr.msk.bf16.mxu1 %vm4675_vm2, %v6254_v53 }
 0x6a9   : > { %v3190_v28 = vpack.c.bf16 %v3181_v30, %v3180_v9  ;;  %v3182_v33 = vmul.f32 %v4567_v24, %v6071_v15  ;;  %v4628_v24 = vld [vmem:[%s4742_s7 + $0x50] sm:$0xff] }
 0x6aa   : > { %v4569_v27 = vpop.eup %4568 }
 0x6ab   : > { %v3183_v51 = vmul.f32 %v4569_v27, %v6075_v11  ;;  %4327 = vmatmul.mubr.msk.bf16.vlgmr.msra.gmra.mrb[92].mxu0 %vm2091_vm3, %v3190_v28  ;;  %v4618_v11 = vld [vmem:[%s4742_s7] sm:$0xff]  ;;  %v4629_v27 = vld [vmem:[%s4742_s7 + $0x58] sm:$0xff] }
 0x6ad   : > { %v3191_v58 = vpack.c.bf16 %v3183_v51, %v3182_v33 }
 0x6af   : > { %4333 = vmatmul.mubr.msk.bf16.vlgmr.msra.gmra.mrb[92].mxu1 %vm2091_vm3, %v3191_v58 }
 0x766   : > { %v3229_v19 = vpop.f32.mrb[80].mxu0 }
 0x767   : > { %v3548_v53 = vmul.f32 %v6140_v13, %v3229_v19  ;;  %v4292_v43 = vpop.f32.mrb[81].mxu0 }
 0x768   : > { %v3232_v15 = vpop.f32.mrb[82].mxu0 }
 0x769   : > { %v3564_v16 = vadd.f32 %v4618_v11, %v3548_v53  ;;  %v3549_v0 = vmul.f32 %v6140_v13, %v3232_v15  ;;  %v4293_v14 = vpop.f32.mrb[83].mxu0  ;;  %v4630_v53 = vld [vmem:[%s4742_s7 + $0x60] sm:$0xff] }
 0x76a   : > { %v3273_v22 = vpop.f32.mrb[80].mxu1 }
 0x76b   : > { %3580 = vst.msk [vmem:[%s6147_s8] sm:$0xff] %vm377_vm0, %v3564_v16  ;;  %v3565_v17 = vadd.f32 %v4619_v4, %v3549_v0  ;;  %v3550_v49 = vmul.f32 %v6140_v13, %v3273_v22  ;;  %v4298_v20 = vpop.f32.mrb[81].mxu1  ;;  %v4631_v0 = vld [vmem:[%s4742_s7 + $0x68] sm:$0xff] }
 0x76c   : > { %v3276_v8 = vpop.f32.mrb[82].mxu1 }
 0x76d   : > { %3581 = vst.msk [vmem:[%s6147_s8 + $0x8] sm:$0xff] %vm377_vm0, %v3565_v17  ;;  %v3566_v26 = vadd.f32 %v4620_v6, %v3550_v49  ;;  %v3551_v55 = vmul.f32 %v6140_v13, %v3276_v8  ;;  %v4299_v47 = vpop.f32.mrb[83].mxu1  ;;  %v4632_v49 = vld [vmem:[%s4742_s7 + $0x70] sm:$0xff] }
 0x76e   : > { %v3317_v41 = vpop.f32.mrb[84].mxu0 }
 0x76f   : > { %3582 = vst.msk [vmem:[%s6147_s8 + $0x10] sm:$0xff] %vm377_vm0, %v3566_v26  ;;  %v3567_v42 = vadd.f32 %v4621_v25, %v3551_v55  ;;  %v3552_v36 = vmul.f32 %v6140_v13, %v3317_v41  ;;  %v4304_v45 = vpop.f32.mrb[85].mxu0  ;;  %v4633_v26 = vld [vmem:[%s4742_s7 + $0x78] sm:$0xff] }
 0x770   : > { %v3320_v35 = vpop.f32.mrb[86].mxu0 }
 0x771   : > { %3583 = vst.msk [vmem:[%s6147_s8 + $0x18] sm:$0xff] %vm377_vm0, %v3567_v42  ;;  %v3568_v29 = vadd.f32 %v4622_v54, %v3552_v36  ;;  %v3553_v62 = vmul.f32 %v6140_v13, %v3320_v35  ;;  %v4305_v23 = vpop.f32.mrb[87].mxu0 }
 0x772   : > { %v3361_v7 = vpop.f32.mrb[84].mxu1 }
 0x773   : > { %3584 = vst.msk [vmem:[%s6147_s8 + $0x20] sm:$0xff] %vm377_vm0, %v3568_v29  ;;  %v3569_v52 = vadd.f32 %v4623_v31, %v3553_v62  ;;  %v3554_v61 = vmul.f32 %v6140_v13, %v3361_v7  ;;  %v4310_v39 = vpop.f32.mrb[85].mxu1 }
 0x774   : > { %v3364_v50 = vpop.f32.mrb[86].mxu1 }
 0x775   : > { %3585 = vst.msk [vmem:[%s6147_s8 + $0x28] sm:$0xff] %vm377_vm0, %v3569_v52  ;;  %v3570_v5 = vadd.f32 %v4624_v37, %v3554_v61  ;;  %v3555_v2 = vmul.f32 %v6140_v13, %v3364_v50  ;;  %v4311_v18 = vpop.f32.mrb[87].mxu1 }
 0x776   : > { %v3405_v34 = vpop.f32.mrb[88].mxu0 }
 0x777   : > { %3586 = vst.msk [vmem:[%s6147_s8 + $0x30] sm:$0xff] %vm377_vm0, %v3570_v5  ;;  %v3571_v38 = vadd.f32 %v4625_v40, %v3555_v2  ;;  %v3556_v44 = vmul.f32 %v6140_v13, %v3405_v34  ;;  %v4316_v10 = vpop.f32.mrb[89].mxu0 }
 0x778   : > { %v3408_v46 = vpop.f32.mrb[90].mxu0 }
 0x779   : > { %3587 = vst.msk [vmem:[%s6147_s8 + $0x38] sm:$0xff] %vm377_vm0, %v3571_v38  ;;  %v3572_v48 = vadd.f32 %v4626_v57, %v3556_v44  ;;  %v3557_v21 = vmul.f32 %v6140_v13, %v3408_v46  ;;  %v4317_v59 = vpop.f32.mrb[91].mxu0 }
 0x77a   : > { %v3449_v60 = vpop.f32.mrb[88].mxu1 }
 0x77b   : > { %3588 = vst.msk [vmem:[%s6147_s8 + $0x40] sm:$0xff] %vm377_vm0, %v3572_v48  ;;  %v3573_v3 = vadd.f32 %v4627_v63, %v3557_v21  ;;  %v3558_v12 = vmul.f32 %v6140_v13, %v3449_v60  ;;  %v4322_v9 = vpop.f32.mrb[89].mxu1 }
 0x77c   : > { %v3452_v30 = vpop.f32.mrb[90].mxu1 }
 0x77d   : > { %3589 = vst.msk [vmem:[%s6147_s8 + $0x48] sm:$0xff] %vm377_vm0, %v3573_v3  ;;  %v3574_v56 = vadd.f32 %v4628_v24, %v3558_v12  ;;  %v3559_v1 = vmul.f32 %v6140_v13, %v3452_v30  ;;  %v4323_v32 = vpop.f32.mrb[91].mxu1 }
 0x77e   : > { %v3493_v28 = vpop.f32.mrb[92].mxu0 }
 0x77f   : > { %3590 = vst.msk [vmem:[%s6147_s8 + $0x50] sm:$0xff] %vm377_vm0, %v3574_v56  ;;  %v3575_v33 = vadd.f32 %v4629_v27, %v3559_v1  ;;  %v3560_v51 = vmul.f32 %v6140_v13, %v3493_v28  ;;  %v4328_v58 = vpop.f32.mrb[93].mxu0 }
 0x780   : > { %v3496_v19 = vpop.f32.mrb[94].mxu0 }
 0x781   : > { %3591 = vst.msk [vmem:[%s6147_s8 + $0x58] sm:$0xff] %vm377_vm0, %v3575_v33  ;;  %v3576_v43 = vadd.f32 %v4630_v53, %v3560_v51  ;;  %v3561_v15 = vmul.f32 %v6140_v13, %v3496_v19  ;;  %v4329_v11 = vpop.f32.mrb[95].mxu0 }
 0x782   : > { %v3537_v16 = vpop.f32.mrb[92].mxu1 }
 0x783   : > { %3592 = vst.msk [vmem:[%s6147_s8 + $0x60] sm:$0xff] %vm377_vm0, %v3576_v43  ;;  %v3577_v14 = vadd.f32 %v4631_v0, %v3561_v15  ;;  %v3562_v22 = vmul.f32 %v6140_v13, %v3537_v16  ;;  %v4334_v4 = vpop.f32.mrb[93].mxu1 }
 0x784   : > { %v3540_v17 = vpop.f32.mrb[94].mxu1 }
 0x785   : > { %3593 = vst.msk [vmem:[%s6147_s8 + $0x68] sm:$0xff] %vm377_vm0, %v3577_v14  ;;  %v3578_v20 = vadd.f32 %v4632_v49, %v3562_v22  ;;  %v3563_v8 = vmul.f32 %v6140_v13, %v3540_v17  ;;  %v4335_v6 = vpop.f32.mrb[95].mxu1 }
 0x787   : > { %3594 = vst.msk [vmem:[%s6147_s8 + $0x70] sm:$0xff] %vm377_vm0, %v3578_v20  ;;  %v3579_v55 = vadd.f32 %v4633_v26, %v3563_v8 }
 0x789   : > { %3595 = vst.msk [vmem:[%s6147_s8 + $0x78] sm:$0xff] %vm377_vm0, %v3579_v55 }
 0x78a PF: > { %s16_s22 = sadd.s32 1, %s4672_s22   ;;  %s6277_s18 = smov %s4664_s20 }
 0x78b   : > { %p13_p7 = scmp.ge.s32.totalorder %s16_s22, 6   ;;  %s6278_s19 = smov %s4668_s21 }
 0x78c   : > { %s6279_s20 = smov %s6282_s23  ;;  %s6280_s21 = smov %s6286_s24 }
 0x78d   :  { %15 = sbr.rel (!%p13_p7) target bundleno = 3 (0x3), region = 84 }

</bundles_post_ra>
